<compile_context>
chip_gen: v7x
topology: tpu7x:2x2x1
jax: 0.10.0
libtpu: 0.0.40
codegen_flags: <defaults>
</compile_context>

<pallas_src>
import numpy as np
import jax
import jax.numpy as jnp
from jax.experimental import pallas as pl
from jax.experimental.pallas import tpu as pltpu

EPS = 1e-5       # nn.BatchNorm2d default eps
CP = 128         # lane-dense padded channel width
BF16 = jnp.bfloat16
F32 = jnp.float32


# ---------------------------------------------------------------------------
# in-kernel helpers
# ---------------------------------------------------------------------------
def _stats_rows(y):
    """(2, Cp) partial BN statistics of an f32 tile: row 0 = sum, row 1 = sumsq."""
    return jnp.concatenate(
        [jnp.sum(y, axis=0, keepdims=True),
         jnp.sum(y * y, axis=0, keepdims=True)], axis=0)


# ---------------------------------------------------------------------------
# Pallas kernels
# ---------------------------------------------------------------------------
def stage1_kernel(x_ref, w_ref, y_ref, st_ref):
    # conv1x1 as (TILE_M, Cp)bf16 @ (Cp, Cp)bf16 -> f32; stats from the f32 result.
    y = jnp.dot(x_ref[...], w_ref[...], preferred_element_type=jnp.float32)
    y_ref[...] = y.astype(y_ref.dtype)
    st_ref[0] = _stats_rows(y)


def make_stage2_kernel(H, W, HW, Cp, PAD):
    """bn1 + relu + 3x3 conv (stride 1, pad 1) + partial stats, one image/step.

    The 3x3 conv is 9 accumulated (HW,Cp)x(Cp,Cp) MXU matmuls; out-of-image
    taps are zeroed with hoisted row/col masks, so the scratch halo rows are
    never initialised nor trusted (no cross-step scratch state)."""
    def stage2_kernel(y1_ref, w2_ref, sc_ref, bi_ref, y2_ref, st_ref, zbuf_ref):
        # bn1 + relu in f32 using precomputed (scale, bias) from global stats.
        z = jnp.maximum(
            y1_ref[0].astype(jnp.float32) * sc_ref[...] + bi_ref[...], 0.0)
        zbuf_ref[PAD:PAD + HW, :] = z            # aligned store; halos untouched

        # hoisted validity masks (computed once, reused across the 9 taps)
        row = jax.lax.broadcasted_iota(jnp.int32, (HW, 1), 0)
        col = row % W
        top_ok = row >= W              # row offset -1 valid
        bot_ok = row < HW - W          # row offset +1 valid
        left_ok = col >= 1             # col offset -1 valid
        right_ok = col <= W - 2        # col offset +1 valid

        acc = jnp.zeros((HW, Cp), jnp.float32)
        for kh in range(3):
            for kw in range(3):
                shift = (kh - 1) * W + (kw - 1)
                v = zbuf_ref[PAD + shift:PAD + shift + HW, :]
                mask = None
                if kh == 0:
                    mask = top_ok
                elif kh == 2:
                    mask = bot_ok
                if kw == 0:
                    mask = left_ok if mask is None else jnp.logical_and(mask, left_ok)
                elif kw == 2:
                    mask = right_ok if mask is None else jnp.logical_and(mask, right_ok)
                if mask is not None:
                    v = jnp.where(mask, v, 0.0)
                acc = acc + jnp.dot(v.astype(jnp.bfloat16), w2_ref[kh * 3 + kw],
                                    preferred_element_type=jnp.float32)

        y2_ref[0] = acc.astype(y2_ref.dtype)
        st_ref[0] = _stats_rows(acc)
    return stage2_kernel


def stage3_kernel(y2_ref, w_ref, sc_ref, bi_ref, y_ref, st_ref):
    # bn2 + relu (f32) -> conv1x1 in bf16; stats from the f32 result.
    z = jnp.maximum(
        y2_ref[...].astype(jnp.float32) * sc_ref[...] + bi_ref[...], 0.0)
    y = jnp.dot(z.astype(jnp.bfloat16), w_ref[...],
                preferred_element_type=jnp.float32)
    y_ref[...] = y.astype(y_ref.dtype)
    st_ref[0] = _stats_rows(y)


def residual_kernel(y3_ref, x_ref, sc_ref, bi_ref, o_ref):
    # bn3 + residual add + relu (identity tile read directly from x).
    o_ref[...] = jnp.maximum(
        y3_ref[...].astype(jnp.float32) * sc_ref[...] + bi_ref[...]
        + x_ref[...].astype(jnp.float32), 0.0)


# ---------------------------------------------------------------------------
# wrapper glue (layout conversion, channel padding, BN stat finalization)
# ---------------------------------------------------------------------------
def _pad_cols(a, n, dtype):
    return jnp.pad(a, ((0, 0), (0, n - a.shape[1]))).astype(dtype)


def _pad_vec(v, n):
    return jnp.pad(v.astype(jnp.float32), (0, n - v.shape[0]))


def _pad_mat(a, n, dtype):
    return jnp.pad(a.astype(jnp.float32),
                   ((0, n - a.shape[0]), (0, n - a.shape[1]))).astype(dtype)


def _bn_scale_bias(stats, gamma_p, beta_p, count):
    """Finalize per-channel BN scale/bias from per-tile (sum, sumsq) partials."""
    s = jnp.sum(stats[:, 0, :], axis=0)
    ss = jnp.sum(stats[:, 1, :], axis=0)
    mean = s / count
    var = ss / count - mean * mean          # single-pass biased variance
    # TODO(synk): switch to shifted / Welford partials for very large M.
    inv = jax.lax.rsqrt(var + EPS)
    scale = gamma_p * inv
    bias = beta_p - mean * scale
    return scale.reshape(1, -1), bias.reshape(1, -1)


def _pick_tile(m):
    # Memory-bound stages: biggest tile that divides M (amortize ~0.35us/step).
    for t in (4096, 2048, 1024, 512, 256, 128, 64, 32, 16):
        if m % t == 0:
            return t
    return m   # TODO(synk): cdiv grid + masked tail instead of full-array block


def bottleneck_forward(x_nchw, params):
    (w1, g1, b1, w2, g2, b2, w3, g3, b3) = params
    N, Cin, H, W = x_nchw.shape
    planes = w1.shape[0]
    out_planes = w3.shape[0]
    HW = H * W
    M = N * HW
    # TODO(synk): 256-lane channel tiling / out-channel grid axis for real widths.
    assert max(Cin, planes, out_planes) <= CP
    assert out_planes == Cin, "residual add requires matching channel count"
    assert HW % 8 == 0, "flattened image size must be sublane aligned"

    TILE_M = _pick_tile(M)
    GRID_M = M // TILE_M
    PAD = ((W + 1 + 7) // 8) * 8            # aligned halo rows for the 3x3 taps

    cparams = pltpu.CompilerParams(
        dimension_semantics=("parallel",),
        vmem_limit_bytes=32 * 1024 * 1024)

    # layout glue: NCHW -> NHWC -> (M, CP) channel-padded bf16; weights -> bf16
    x2d = _pad_cols(jnp.transpose(x_nchw, (0, 2, 3, 1)).reshape(M, Cin), CP, BF16)
    w1m = _pad_mat(w1[:, :, 0, 0].T, CP, BF16)                   # (CP, CP)
    w3m = _pad_mat(w3[:, :, 0, 0].T, CP, BF16)                   # (CP, CP)
    w2t = jnp.transpose(w2, (2, 3, 1, 0)).reshape(9, planes, planes)
    w2m = jnp.zeros((9, CP, CP), F32).at[:, :planes, :planes].set(w2t).astype(BF16)
    g1p, b1p = _pad_vec(g1, CP), _pad_vec(b1, CP)
    g2p, b2p = _pad_vec(g2, CP), _pad_vec(b2, CP)
    g3p, b3p = _pad_vec(g3, CP), _pad_vec(b3, CP)

    row_spec = pl.BlockSpec((TILE_M, CP), lambda i: (i, 0))
    mat_spec = pl.BlockSpec((CP, CP), lambda i: (0, 0))
    vec_spec = pl.BlockSpec((1, CP), lambda i: (0, 0))
    st_spec = pl.BlockSpec((1, 2, CP), lambda i: (i, 0, 0))
    st_shape = lambda g: jax.ShapeDtypeStruct((g, 2, CP), F32)

    # ---- stage 1: conv1x1 (+ partial BN stats) -----------------------------
    y1_raw, st1 = pl.pallas_call(
        stage1_kernel,
        grid=(GRID_M,),
        in_specs=[row_spec, mat_spec],
        out_specs=(row_spec, st_spec),
        out_shape=(jax.ShapeDtypeStruct((M, CP), BF16), st_shape(GRID_M)),
        compiler_params=cparams,
    )(x2d, w1m)
    sc1, bi1 = _bn_scale_bias(st1, g1p, b1p, M)

    # ---- stage 2: bn1+relu -> 3x3 conv as 9 accumulated matmuls ------------
    img_spec = pl.BlockSpec((1, HW, CP), lambda n: (n, 0, 0))
    y2_raw, st2 = pl.pallas_call(
        make_stage2_kernel(H, W, HW, CP, PAD),
        grid=(N,),
        in_specs=[img_spec,
                  pl.BlockSpec((9, CP, CP), lambda n: (0, 0, 0)),
                  vec_spec, vec_spec],
        out_specs=(img_spec, st_spec),
        out_shape=(jax.ShapeDtypeStruct((N, HW, CP), BF16), st_shape(N)),
        scratch_shapes=[pltpu.VMEM((2 * PAD + HW, CP), F32)],
        compiler_params=cparams,
    )(y1_raw.reshape(N, HW, CP), w2m, sc1, bi1)
    sc2, bi2 = _bn_scale_bias(st2, g2p, b2p, M)

    # ---- stage 3: bn2+relu -> conv1x1 (+ partial stats) --------------------
    y3_raw, st3 = pl.pallas_call(
        stage3_kernel,
        grid=(GRID_M,),
        in_specs=[row_spec, mat_spec, vec_spec, vec_spec],
        out_specs=(row_spec, st_spec),
        out_shape=(jax.ShapeDtypeStruct((M, CP), BF16), st_shape(GRID_M)),
        compiler_params=cparams,
    )(y2_raw.reshape(M, CP), w3m, sc2, bi2)
    sc3, bi3 = _bn_scale_bias(st3, g3p, b3p, M)

    # ---- stage 4: bn3 + residual add + relu --------------------------------
    out2d = pl.pallas_call(
        residual_kernel,
        grid=(GRID_M,),
        in_specs=[row_spec, row_spec, vec_spec, vec_spec],
        out_specs=row_spec,
        out_shape=jax.ShapeDtypeStruct((M, CP), F32),
        compiler_params=cparams,
    )(y3_raw, x2d, sc3, bi3)

    out = out2d[:, :out_planes].reshape(N, H, W, out_planes)
    return jnp.transpose(out, (0, 3, 1, 2))                    # NHWC -> NCHW


# ---------------------------------------------------------------------------
# pure-JAX reference (verification only)
#   mirror_bf16=True reproduces the kernel's precision strategy (bf16 matmul
#   operands + bf16 inter-stage storage, f32 accumulation, BN stats from the
#   f32 conv result) so the structural check can be tight.
# ---------------------------------------------------------------------------
def bottleneck_reference(x, params, mirror_bf16=False):
    (w1, g1, b1, w2, g2, b2, w3, g3, b3) = params
    cast = (lambda a: a.astype(jnp.bfloat16)) if mirror_bf16 else (lambda a: a)
    store = ((lambda a: a.astype(jnp.bfloat16).astype(jnp.float32))
             if mirror_bf16 else (lambda a: a))

    def conv(z, w, pad):
        return jax.lax.conv_general_dilated(
            cast(z), cast(w), (1, 1), [(pad, pad), (pad, pad)],
            dimension_numbers=("NCHW", "OIHW", "NCHW"),
            preferred_element_type=jnp.float32)

    def bn_scale_bias(y, g, b):
        mean = y.mean(axis=(0, 2, 3))
        var = (y * y).mean(axis=(0, 2, 3)) - mean * mean
        inv = jax.lax.rsqrt(var + EPS)
        scale = (g * inv).reshape(1, -1, 1, 1)
        bias = (b - mean * g * inv).reshape(1, -1, 1, 1)
        return scale, bias

    xq = store(x)
    y1 = conv(xq, w1, 0)
    s1, c1 = bn_scale_bias(y1, g1, b1)
    z1 = jax.nn.relu(store(y1) * s1 + c1)
    y2 = conv(z1, w2, 1)
    s2, c2 = bn_scale_bias(y2, g2, b2)
    z2 = jax.nn.relu(store(y2) * s2 + c2)
    y3 = conv(z2, w3, 0)
    s3, c3 = bn_scale_bias(y3, g3, b3)
    return jax.nn.relu(store(y3) * s3 + c3 + xq)


# ---------------------------------------------------------------------------
# main
# ---------------------------------------------------------------------------
if __name__ == "__main__":
    # Bottleneck(inplanes=16, planes=4, stride=1, downsample=None)
    N, inplanes, H, W = 2, 16, 8, 8
    planes = 4
    expansion = 4
    out_planes = planes * expansion   # == inplanes so the residual add works

    key = jax.random.PRNGKey(0)
    ks = jax.random.split(key, 8)

    x = jax.random.normal(ks[0], (N, inplanes, H, W), jnp.float32)

    w1 = 0.2 * jax.random.normal(ks[1], (planes, inplanes, 1, 1), jnp.float32)
    w2 = 0.2 * jax.random.normal(ks[2], (planes, planes, 3, 3), jnp.float32)
    w3 = 0.2 * jax.random.normal(ks[3], (out_planes, planes, 1, 1), jnp.float32)
    g1 = 1.0 + 0.1 * jax.random.normal(ks[4], (planes,), jnp.float32)
    b1 = 0.1 * jax.random.normal(ks[5], (planes,), jnp.float32)
    g2 = 1.0 + 0.1 * jax.random.normal(ks[6], (planes,), jnp.float32)
    b2 = 0.1 * jax.random.normal(ks[7], (planes,), jnp.float32)
    g3 = jnp.ones((out_planes,), jnp.float32)
    b3 = jnp.zeros((out_planes,), jnp.float32)

    params = (w1, g1, b1, w2, g2, b2, w3, g3, b3)

    out = jax.jit(bottleneck_forward)(x, params)
    out = np.asarray(jax.block_until_ready(out))
    assert out.shape == (N, out_planes, H, W)

    # 1) Tight structural check vs a reference mirroring the kernel's bf16
    #    operand / bf16 storage strategy (f32 accumulation, f32 BN stats).
    ref_mirror = np.asarray(bottleneck_reference(x, params, mirror_bf16=True))
    assert np.allclose(out, ref_mirror, atol=2e-3, rtol=2e-3), \
        f"mirror-ref max abs diff {np.abs(out - ref_mirror).max()}"

    # 2) Sanity bound on the overall bf16 deviation vs full-f32 module semantics
    #    (bf16 operand rounding through three BN-renormalized conv stages).
    ref_f32 = np.asarray(bottleneck_reference(x, params, mirror_bf16=False))
    rel_l2 = np.linalg.norm(out - ref_f32) / np.linalg.norm(ref_f32)
    assert rel_l2 < 3e-2, f"relative L2 error vs f32 reference: {rel_l2}"

    print("KERNEL_OK")
</pallas_src>

<mosaic_0001>
module attributes {stable_mosaic.version = 11 : i64} {
  func.func @stage1_kernel(%arg0: i32, %arg1: memref<128x128xbf16, #tpu.memory_space<vmem>>, %arg2: memref<128x128xbf16, #tpu.memory_space<vmem>>, %arg3: memref<128x128xbf16, #tpu.memory_space<vmem>>, %arg4: memref<1x2x128xf32, #tpu.memory_space<vmem>>) attributes {dimension_semantics = [#tpu.dimension_semantics<parallel>], iteration_bounds = array<i64: 1>, scalar_prefetch = 0 : i64, scratch_operands = 0 : i64, tpu.core_type = #tpu.core_type<tc>, window_params = [{transform_indices = @transform_0, window_bounds = array<i64: 128, 128>}, {pipeline_mode = #tpu.pipeline_mode<synchronous>, transform_indices = @transform_1, window_bounds = array<i64: 128, 128>}, {transform_indices = @transform_2, window_bounds = array<i64: 128, 128>}, {transform_indices = @transform_3, window_bounds = array<i64: 1, 2, 128>}]} {
    %c0 = arith.constant 0 : index
    %c0_0 = arith.constant 0 : index
    %0 = vector.load %arg1[%c0, %c0_0] : memref<128x128xbf16, #tpu.memory_space<vmem>>, vector<128x128xbf16>
    %c0_1 = arith.constant 0 : index
    %c0_2 = arith.constant 0 : index
    %1 = vector.load %arg2[%c0_1, %c0_2] : memref<128x128xbf16, #tpu.memory_space<vmem>>, vector<128x128xbf16>
    %cst = arith.constant dense<0.000000e+00> : vector<128x128xf32>
    %2 = tpu.matmul %0, %1, %cst {dimension_numbers = #tpu.dot_dimension_numbers<[1], [0], [0], [1], [0, 0, 1, 1], [], []>} : vector<128x128xbf16>, vector<128x128xbf16>, vector<128x128xf32> -> vector<128x128xf32>
    %3 = arith.truncf %2 : vector<128x128xf32> to vector<128x128xbf16>
    %c0_3 = arith.constant 0 : index
    %c0_4 = arith.constant 0 : index
    %4 = vector.load %arg3[%c0_3, %c0_4] : memref<128x128xbf16, #tpu.memory_space<vmem>>, vector<128x128xbf16>
    tpu.vector_store %arg3[%c0_3, %c0_4], %3 {strides = array<i32>} : memref<128x128xbf16, #tpu.memory_space<vmem>>, vector<128x128xbf16>,
    %cst_5 = arith.constant dense<0.000000e+00> : vector<128xf32>
    %5 = vector.multi_reduction <add>, %2, %cst_5 [0] : vector<128x128xf32> to vector<128xf32>
    %6 = vector.shape_cast %5 : vector<128xf32> to vector<1x128xf32>
    %7 = arith.mulf %2, %2 : vector<128x128xf32>
    %cst_6 = arith.constant dense<0.000000e+00> : vector<128xf32>
    %8 = vector.multi_reduction <add>, %7, %cst_6 [0] : vector<128x128xf32> to vector<128xf32>
    %9 = vector.shape_cast %8 : vector<128xf32> to vector<1x128xf32>
    %10 = tpu.concatenate %6, %9 in 0 : vector<1x128xf32>, vector<1x128xf32> -> vector<2x128xf32>
    %c0_7 = arith.constant 0 : index
    %c0_8 = arith.constant 0 : index
    %c0_9 = arith.constant 0 : index
    %11 = vector.load %arg4[%c0_7, %c0_8, %c0_9] : memref<1x2x128xf32, #tpu.memory_space<vmem>>, vector<1x2x128xf32>
    %12 = vector.shape_cast %11 : vector<1x2x128xf32> to vector<2x128xf32>
    %13 = vector.shape_cast %10 : vector<2x128xf32> to vector<1x2x128xf32>
    tpu.vector_store %arg4[%c0_7, %c0_8, %c0_9], %13 {strides = array<i32>} : memref<1x2x128xf32, #tpu.memory_space<vmem>>, vector<1x2x128xf32>,
    return
  }
  func.func @transform_0(%arg0: i32) -> (i32, i32) {
    %c0_i32 = arith.constant 0 : i32
    %c0_i32_0 = arith.constant 0 : i32
    return %arg0, %c0_i32 : i32, i32
  }
  func.func @transform_1(%arg0: i32) -> (i32, i32) {
    %c0_i32 = arith.constant 0 : i32
    %c0_i32_0 = arith.constant 0 : i32
    %c0_i32_1 = arith.constant 0 : i32
    return %c0_i32, %c0_i32_0 : i32, i32
  }
  func.func @transform_2(%arg0: i32) -> (i32, i32) {
    %c0_i32 = arith.constant 0 : i32
    %c0_i32_0 = arith.constant 0 : i32
    return %arg0, %c0_i32 : i32, i32
  }
  func.func @transform_3(%arg0: i32) -> (i32, i32, i32) {
    %c0_i32 = arith.constant 0 : i32
    %c0_i32_0 = arith.constant 0 : i32
    %c0_i32_1 = arith.constant 0 : i32
    return %arg0, %c0_i32, %c0_i32_0 : i32, i32, i32
  }
}

module attributes {stable_mosaic.version = 11 : i64} {
  func.func @stage2_kernel(%arg0: i32, %arg1: memref<1x64x128xbf16, #tpu.memory_space<vmem>>, %arg2: memref<9x128x128xbf16, #tpu.memory_space<vmem>>, %arg3: memref<1x128xf32, #tpu.memory_space<vmem>>, %arg4: memref<1x128xf32, #tpu.memory_space<vmem>>, %arg5: memref<1x64x128xbf16, #tpu.memory_space<vmem>>, %arg6: memref<1x2x128xf32, #tpu.memory_space<vmem>>, %arg7: memref<96x128xf32, #tpu.memory_space<vmem>>) attributes {dimension_semantics = [#tpu.dimension_semantics<parallel>], iteration_bounds = array<i64: 2>, scalar_prefetch = 0 : i64, scratch_operands = 1 : i64, tpu.core_type = #tpu.core_type<tc>, window_params = [{transform_indices = @transform_0, window_bounds = array<i64: 1, 64, 128>}, {pipeline_mode = #tpu.pipeline_mode<synchronous>, transform_indices = @transform_1, window_bounds = array<i64: 9, 128, 128>}, {pipeline_mode = #tpu.pipeline_mode<synchronous>, transform_indices = @transform_2, window_bounds = array<i64: 1, 128>}, {pipeline_mode = #tpu.pipeline_mode<synchronous>, transform_indices = @transform_3, window_bounds = array<i64: 1, 128>}, {transform_indices = @transform_4, window_bounds = array<i64: 1, 64, 128>}, {transform_indices = @transform_5, window_bounds = array<i64: 1, 2, 128>}]} {
    %c0 = arith.constant 0 : index
    %c0_0 = arith.constant 0 : index
    %c0_1 = arith.constant 0 : index
    %0 = vector.load %arg1[%c0, %c0_0, %c0_1] : memref<1x64x128xbf16, #tpu.memory_space<vmem>>, vector<1x64x128xbf16>
    %1 = vector.shape_cast %0 : vector<1x64x128xbf16> to vector<64x128xbf16>
    %2 = arith.extf %1 : vector<64x128xbf16> to vector<64x128xf32>
    %c0_2 = arith.constant 0 : index
    %c0_3 = arith.constant 0 : index
    %3 = vector.load %arg3[%c0_2, %c0_3] : memref<1x128xf32, #tpu.memory_space<vmem>>, vector<1x128xf32>
    %4 = vector.broadcast %3 : vector<1x128xf32> to vector<64x128xf32>
    %5 = arith.mulf %2, %4 : vector<64x128xf32>
    %c0_4 = arith.constant 0 : index
    %c0_5 = arith.constant 0 : index
    %6 = vector.load %arg4[%c0_4, %c0_5] : memref<1x128xf32, #tpu.memory_space<vmem>>, vector<1x128xf32>
    %7 = vector.broadcast %6 : vector<1x128xf32> to vector<64x128xf32>
    %8 = arith.addf %5, %7 : vector<64x128xf32>
    %cst = arith.constant 0.000000e+00 : f32
    %9 = vector.broadcast %cst : f32 to vector<64x128xf32>
    %10 = arith.maximumf %8, %9 : vector<64x128xf32>
    %c16 = arith.constant 16 : index
    %c0_6 = arith.constant 0 : index
    %11 = vector.load %arg7[%c16, %c0_6] : memref<96x128xf32, #tpu.memory_space<vmem>>, vector<64x128xf32>
    tpu.vector_store %arg7[%c16, %c0_6], %10 {strides = array<i32>} : memref<96x128xf32, #tpu.memory_space<vmem>>, vector<64x128xf32>,
    %12 = tpu.iota {dimensions = array<i32: 0>} : vector<64x1xi32>
    %c8_i32 = arith.constant 8 : i32
    %c0_i32 = arith.constant 0 : i32
    %13 = arith.cmpi eq, %c8_i32, %c0_i32 : i32
    %c1_i32 = arith.constant 1 : i32
    %14 = arith.select %13, %c1_i32, %c8_i32 : i32
    %15 = vector.broadcast %14 : i32 to vector<64x1xi32>
    %16 = arith.remsi %12, %15 : vector<64x1xi32>
    %c0_i32_7 = arith.constant 0 : i32
    %17 = vector.broadcast %c0_i32_7 : i32 to vector<64x1xi32>
    %18 = arith.cmpi ne, %16, %17 : vector<64x1xi32>
    %c0_i32_8 = arith.constant 0 : i32
    %19 = vector.broadcast %c0_i32_8 : i32 to vector<64x1xi32>
    %20 = arith.cmpi slt, %16, %19 : vector<64x1xi32>
    %c0_i32_9 = arith.constant 0 : i32
    %21 = arith.cmpi slt, %14, %c0_i32_9 : i32
    %22 = vector.broadcast %21 : i1 to vector<64x1xi1>
    %23 = vector.broadcast %22 : vector<64x1xi1> to vector<64x1xi1>
    %24 = arith.xori %20, %23 : vector<64x1xi1>
    %25 = arith.andi %24, %18 : vector<64x1xi1>
    %26 = vector.broadcast %14 : i32 to vector<64x1xi32>
    %27 = arith.addi %16, %26 : vector<64x1xi32>
    %28 = arith.select %25, %27, %16 : vector<64x1xi1>, vector<64x1xi32>
    %c8_i32_10 = arith.constant 8 : i32
    %29 = vector.broadcast %c8_i32_10 : i32 to vector<64x1xi32>
    %30 = arith.cmpi sge, %12, %29 : vector<64x1xi32>
    %c56_i32 = arith.constant 56 : i32
    %31 = vector.broadcast %c56_i32 : i32 to vector<64x1xi32>
    %32 = arith.cmpi slt, %12, %31 : vector<64x1xi32>
    %c1_i32_11 = arith.constant 1 : i32
    %33 = vector.broadcast %c1_i32_11 : i32 to vector<64x1xi32>
    %34 = arith.cmpi sge, %28, %33 : vector<64x1xi32>
    %c6_i32 = arith.constant 6 : i32
    %35 = vector.broadcast %c6_i32 : i32 to vector<64x1xi32>
    %36 = arith.cmpi sle, %28, %35 : vector<64x1xi32>
    %cst_12 = arith.constant 0.000000e+00 : f32
    %37 = vector.broadcast %cst_12 : f32 to vector<64x128xf32>
    %c7 = arith.constant 7 : index
    %c0_13 = arith.constant 0 : index
    %38 = vector.load %arg7[%c7, %c0_13] : memref<96x128xf32, #tpu.memory_space<vmem>>, vector<64x128xf32>
    %39 = arith.andi %30, %34 : vector<64x1xi1>
    %cst_14 = arith.constant 0.000000e+00 : f32
    %40 = vector.shape_cast %39 : vector<64x1xi1> to vector<64x1xi1>
    %41 = vector.broadcast %40 : vector<64x1xi1> to vector<64x128xi1>
    %42 = vector.broadcast %cst_14 : f32 to vector<64x128xf32>
    %43 = arith.select %41, %38, %42 : vector<64x128xi1>, vector<64x128xf32>
    %44 = arith.truncf %43 : vector<64x128xf32> to vector<64x128xbf16>
    %c0_15 = arith.constant 0 : index
    %c0_16 = arith.constant 0 : index
    %c0_17 = arith.constant 0 : index
    %45 = vector.load %arg2[%c0_15, %c0_16, %c0_17] : memref<9x128x128xbf16, #tpu.memory_space<vmem>>, vector<1x128x128xbf16>
    %46 = vector.shape_cast %45 : vector<1x128x128xbf16> to vector<128x128xbf16>
    %cst_18 = arith.constant dense<0.000000e+00> : vector<64x128xf32>
    %47 = tpu.matmul %44, %46, %cst_18 {dimension_numbers = #tpu.dot_dimension_numbers<[1], [0], [0], [1], [0, 0, 1, 1], [], []>} : vector<64x128xbf16>, vector<128x128xbf16>, vector<64x128xf32> -> vector<64x128xf32>
    %48 = arith.addf %37, %47 : vector<64x128xf32>
    %c8 = arith.constant 8 : index
    %c0_19 = arith.constant 0 : index
    %49 = vector.load %arg7[%c8, %c0_19] : memref<96x128xf32, #tpu.memory_space<vmem>>, vector<64x128xf32>
    %cst_20 = arith.constant 0.000000e+00 : f32
    %50 = vector.shape_cast %30 : vector<64x1xi1> to vector<64x1xi1>
    %51 = vector.broadcast %50 : vector<64x1xi1> to vector<64x128xi1>
    %52 = vector.broadcast %cst_20 : f32 to vector<64x128xf32>
    %53 = arith.select %51, %49, %52 : vector<64x128xi1>, vector<64x128xf32>
    %54 = arith.truncf %53 : vector<64x128xf32> to vector<64x128xbf16>
    %c1 = arith.constant 1 : index
    %c0_21 = arith.constant 0 : index
    %c0_22 = arith.constant 0 : index
    %55 = vector.load %arg2[%c1, %c0_21, %c0_22] : memref<9x128x128xbf16, #tpu.memory_space<vmem>>, vector<1x128x128xbf16>
    %56 = vector.shape_cast %55 : vector<1x128x128xbf16> to vector<128x128xbf16>
    %cst_23 = arith.constant dense<0.000000e+00> : vector<64x128xf32>
    %57 = tpu.matmul %54, %56, %cst_23 {dimension_numbers = #tpu.dot_dimension_numbers<[1], [0], [0], [1], [0, 0, 1, 1], [], []>} : vector<64x128xbf16>, vector<128x128xbf16>, vector<64x128xf32> -> vector<64x128xf32>
    %58 = arith.addf %48, %57 : vector<64x128xf32>
    %c9 = arith.constant 9 : index
    %c0_24 = arith.constant 0 : index
    %59 = vector.load %arg7[%c9, %c0_24] : memref<96x128xf32, #tpu.memory_space<vmem>>, vector<64x128xf32>
    %60 = arith.andi %30, %36 : vector<64x1xi1>
    %cst_25 = arith.constant 0.000000e+00 : f32
    %61 = vector.shape_cast %60 : vector<64x1xi1> to vector<64x1xi1>
    %62 = vector.broadcast %61 : vector<64x1xi1> to vector<64x128xi1>
    %63 = vector.broadcast %cst_25 : f32 to vector<64x128xf32>
    %64 = arith.select %62, %59, %63 : vector<64x128xi1>, vector<64x128xf32>
    %65 = arith.truncf %64 : vector<64x128xf32> to vector<64x128xbf16>
    %c2 = arith.constant 2 : index
    %c0_26 = arith.constant 0 : index
    %c0_27 = arith.constant 0 : index
    %66 = vector.load %arg2[%c2, %c0_26, %c0_27] : memref<9x128x128xbf16, #tpu.memory_space<vmem>>, vector<1x128x128xbf16>
    %67 = vector.shape_cast %66 : vector<1x128x128xbf16> to vector<128x128xbf16>
    %cst_28 = arith.constant dense<0.000000e+00> : vector<64x128xf32>
    %68 = tpu.matmul %65, %67, %cst_28 {dimension_numbers = #tpu.dot_dimension_numbers<[1], [0], [0], [1], [0, 0, 1, 1], [], []>} : vector<64x128xbf16>, vector<128x128xbf16>, vector<64x128xf32> -> vector<64x128xf32>
    %69 = arith.addf %58, %68 : vector<64x128xf32>
    %c15 = arith.constant 15 : index
    %c0_29 = arith.constant 0 : index
    %70 = vector.load %arg7[%c15, %c0_29] : memref<96x128xf32, #tpu.memory_space<vmem>>, vector<64x128xf32>
    %cst_30 = arith.constant 0.000000e+00 : f32
    %71 = vector.shape_cast %34 : vector<64x1xi1> to vector<64x1xi1>
    %72 = vector.broadcast %71 : vector<64x1xi1> to vector<64x128xi1>
    %73 = vector.broadcast %cst_30 : f32 to vector<64x128xf32>
    %74 = arith.select %72, %70, %73 : vector<64x128xi1>, vector<64x128xf32>
    %75 = arith.truncf %74 : vector<64x128xf32> to vector<64x128xbf16>
    %c3 = arith.constant 3 : index
    %c0_31 = arith.constant 0 : index
    %c0_32 = arith.constant 0 : index
    %76 = vector.load %arg2[%c3, %c0_31, %c0_32] : memref<9x128x128xbf16, #tpu.memory_space<vmem>>, vector<1x128x128xbf16>
    %77 = vector.shape_cast %76 : vector<1x128x128xbf16> to vector<128x128xbf16>
    %cst_33 = arith.constant dense<0.000000e+00> : vector<64x128xf32>
    %78 = tpu.matmul %75, %77, %cst_33 {dimension_numbers = #tpu.dot_dimension_numbers<[1], [0], [0], [1], [0, 0, 1, 1], [], []>} : vector<64x128xbf16>, vector<128x128xbf16>, vector<64x128xf32> -> vector<64x128xf32>
    %79 = arith.addf %69, %78 : vector<64x128xf32>
    %c16_34 = arith.constant 16 : index
    %c0_35 = arith.constant 0 : index
    %80 = vector.load %arg7[%c16_34, %c0_35] : memref<96x128xf32, #tpu.memory_space<vmem>>, vector<64x128xf32>
    %81 = arith.truncf %80 : vector<64x128xf32> to vector<64x128xbf16>
    %c4 = arith.constant 4 : index
    %c0_36 = arith.constant 0 : index
    %c0_37 = arith.constant 0 : index
    %82 = vector.load %arg2[%c4, %c0_36, %c0_37] : memref<9x128x128xbf16, #tpu.memory_space<vmem>>, vector<1x128x128xbf16>
    %83 = vector.shape_cast %82 : vector<1x128x128xbf16> to vector<128x128xbf16>
    %cst_38 = arith.constant dense<0.000000e+00> : vector<64x128xf32>
    %84 = tpu.matmul %81, %83, %cst_38 {dimension_numbers = #tpu.dot_dimension_numbers<[1], [0], [0], [1], [0, 0, 1, 1], [], []>} : vector<64x128xbf16>, vector<128x128xbf16>, vector<64x128xf32> -> vector<64x128xf32>
    %85 = arith.addf %79, %84 : vector<64x128xf32>
    %c17 = arith.constant 17 : index
    %c0_39 = arith.constant 0 : index
    %86 = vector.load %arg7[%c17, %c0_39] : memref<96x128xf32, #tpu.memory_space<vmem>>, vector<64x128xf32>
    %cst_40 = arith.constant 0.000000e+00 : f32
    %87 = vector.shape_cast %36 : vector<64x1xi1> to vector<64x1xi1>
    %88 = vector.broadcast %87 : vector<64x1xi1> to vector<64x128xi1>
    %89 = vector.broadcast %cst_40 : f32 to vector<64x128xf32>
    %90 = arith.select %88, %86, %89 : vector<64x128xi1>, vector<64x128xf32>
    %91 = arith.truncf %90 : vector<64x128xf32> to vector<64x128xbf16>
    %c5 = arith.constant 5 : index
    %c0_41 = arith.constant 0 : index
    %c0_42 = arith.constant 0 : index
    %92 = vector.load %arg2[%c5, %c0_41, %c0_42] : memref<9x128x128xbf16, #tpu.memory_space<vmem>>, vector<1x128x128xbf16>
    %93 = vector.shape_cast %92 : vector<1x128x128xbf16> to vector<128x128xbf16>
    %cst_43 = arith.constant dense<0.000000e+00> : vector<64x128xf32>
    %94 = tpu.matmul %91, %93, %cst_43 {dimension_numbers = #tpu.dot_dimension_numbers<[1], [0], [0], [1], [0, 0, 1, 1], [], []>} : vector<64x128xbf16>, vector<128x128xbf16>, vector<64x128xf32> -> vector<64x128xf32>
    %95 = arith.addf %85, %94 : vector<64x128xf32>
    %c23 = arith.constant 23 : index
    %c0_44 = arith.constant 0 : index
    %96 = vector.load %arg7[%c23, %c0_44] : memref<96x128xf32, #tpu.memory_space<vmem>>, vector<64x128xf32>
    %97 = arith.andi %32, %34 : vector<64x1xi1>
    %cst_45 = arith.constant 0.000000e+00 : f32
    %98 = vector.shape_cast %97 : vector<64x1xi1> to vector<64x1xi1>
    %99 = vector.broadcast %98 : vector<64x1xi1> to vector<64x128xi1>
    %100 = vector.broadcast %cst_45 : f32 to vector<64x128xf32>
    %101 = arith.select %99, %96, %100 : vector<64x128xi1>, vector<64x128xf32>
    %102 = arith.truncf %101 : vector<64x128xf32> to vector<64x128xbf16>
    %c6 = arith.constant 6 : index
    %c0_46 = arith.constant 0 : index
    %c0_47 = arith.constant 0 : index
    %103 = vector.load %arg2[%c6, %c0_46, %c0_47] : memref<9x128x128xbf16, #tpu.memory_space<vmem>>, vector<1x128x128xbf16>
    %104 = vector.shape_cast %103 : vector<1x128x128xbf16> to vector<128x128xbf16>
    %cst_48 = arith.constant dense<0.000000e+00> : vector<64x128xf32>
    %105 = tpu.matmul %102, %104, %cst_48 {dimension_numbers = #tpu.dot_dimension_numbers<[1], [0], [0], [1], [0, 0, 1, 1], [], []>} : vector<64x128xbf16>, vector<128x128xbf16>, vector<64x128xf32> -> vector<64x128xf32>
    %106 = arith.addf %95, %105 : vector<64x128xf32>
    %c24 = arith.constant 24 : index
    %c0_49 = arith.constant 0 : index
    %107 = vector.load %arg7[%c24, %c0_49] : memref<96x128xf32, #tpu.memory_space<vmem>>, vector<64x128xf32>
    %cst_50 = arith.constant 0.000000e+00 : f32
    %108 = vector.shape_cast %32 : vector<64x1xi1> to vector<64x1xi1>
    %109 = vector.broadcast %108 : vector<64x1xi1> to vector<64x128xi1>
    %110 = vector.broadcast %cst_50 : f32 to vector<64x128xf32>
    %111 = arith.select %109, %107, %110 : vector<64x128xi1>, vector<64x128xf32>
    %112 = arith.truncf %111 : vector<64x128xf32> to vector<64x128xbf16>
    %c7_51 = arith.constant 7 : index
    %c0_52 = arith.constant 0 : index
    %c0_53 = arith.constant 0 : index
    %113 = vector.load %arg2[%c7_51, %c0_52, %c0_53] : memref<9x128x128xbf16, #tpu.memory_space<vmem>>, vector<1x128x128xbf16>
    %114 = vector.shape_cast %113 : vector<1x128x128xbf16> to vector<128x128xbf16>
    %cst_54 = arith.constant dense<0.000000e+00> : vector<64x128xf32>
    %115 = tpu.matmul %112, %114, %cst_54 {dimension_numbers = #tpu.dot_dimension_numbers<[1], [0], [0], [1], [0, 0, 1, 1], [], []>} : vector<64x128xbf16>, vector<128x128xbf16>, vector<64x128xf32> -> vector<64x128xf32>
    %116 = arith.addf %106, %115 : vector<64x128xf32>
    %c25 = arith.constant 25 : index
    %c0_55 = arith.constant 0 : index
    %117 = vector.load %arg7[%c25, %c0_55] : memref<96x128xf32, #tpu.memory_space<vmem>>, vector<64x128xf32>
    %118 = arith.andi %32, %36 : vector<64x1xi1>
    %cst_56 = arith.constant 0.000000e+00 : f32
    %119 = vector.shape_cast %118 : vector<64x1xi1> to vector<64x1xi1>
    %120 = vector.broadcast %119 : vector<64x1xi1> to vector<64x128xi1>
    %121 = vector.broadcast %cst_56 : f32 to vector<64x128xf32>
    %122 = arith.select %120, %117, %121 : vector<64x128xi1>, vector<64x128xf32>
    %123 = arith.truncf %122 : vector<64x128xf32> to vector<64x128xbf16>
    %c8_57 = arith.constant 8 : index
    %c0_58 = arith.constant 0 : index
    %c0_59 = arith.constant 0 : index
    %124 = vector.load %arg2[%c8_57, %c0_58, %c0_59] : memref<9x128x128xbf16, #tpu.memory_space<vmem>>, vector<1x128x128xbf16>
    %125 = vector.shape_cast %124 : vector<1x128x128xbf16> to vector<128x128xbf16>
    %cst_60 = arith.constant dense<0.000000e+00> : vector<64x128xf32>
    %126 = tpu.matmul %123, %125, %cst_60 {dimension_numbers = #tpu.dot_dimension_numbers<[1], [0], [0], [1], [0, 0, 1, 1], [], []>} : vector<64x128xbf16>, vector<128x128xbf16>, vector<64x128xf32> -> vector<64x128xf32>
    %127 = arith.addf %116, %126 : vector<64x128xf32>
    %128 = arith.truncf %127 : vector<64x128xf32> to vector<64x128xbf16>
    %c0_61 = arith.constant 0 : index
    %c0_62 = arith.constant 0 : index
    %c0_63 = arith.constant 0 : index
    %129 = vector.load %arg5[%c0_61, %c0_62, %c0_63] : memref<1x64x128xbf16, #tpu.memory_space<vmem>>, vector<1x64x128xbf16>
    %130 = vector.shape_cast %129 : vector<1x64x128xbf16> to vector<64x128xbf16>
    %131 = vector.shape_cast %128 : vector<64x128xbf16> to vector<1x64x128xbf16>
    tpu.vector_store %arg5[%c0_61, %c0_62, %c0_63], %131 {strides = array<i32>} : memref<1x64x128xbf16, #tpu.memory_space<vmem>>, vector<1x64x128xbf16>,
    %cst_64 = arith.constant dense<0.000000e+00> : vector<128xf32>
    %132 = vector.multi_reduction <add>, %127, %cst_64 [0] : vector<64x128xf32> to vector<128xf32>
    %133 = vector.shape_cast %132 : vector<128xf32> to vector<1x128xf32>
    %134 = arith.mulf %127, %127 : vector<64x128xf32>
    %cst_65 = arith.constant dense<0.000000e+00> : vector<128xf32>
    %135 = vector.multi_reduction <add>, %134, %cst_65 [0] : vector<64x128xf32> to vector<128xf32>
    %136 = vector.shape_cast %135 : vector<128xf32> to vector<1x128xf32>
    %137 = tpu.concatenate %133, %136 in 0 : vector<1x128xf32>, vector<1x128xf32> -> vector<2x128xf32>
    %c0_66 = arith.constant 0 : index
    %c0_67 = arith.constant 0 : index
    %c0_68 = arith.constant 0 : index
    %138 = vector.load %arg6[%c0_66, %c0_67, %c0_68] : memref<1x2x128xf32, #tpu.memory_space<vmem>>, vector<1x2x128xf32>
    %139 = vector.shape_cast %138 : vector<1x2x128xf32> to vector<2x128xf32>
    %140 = vector.shape_cast %137 : vector<2x128xf32> to vector<1x2x128xf32>
    tpu.vector_store %arg6[%c0_66, %c0_67, %c0_68], %140 {strides = array<i32>} : memref<1x2x128xf32, #tpu.memory_space<vmem>>, vector<1x2x128xf32>,
    return
  }
  func.func @transform_0(%arg0: i32) -> (i32, i32, i32) {
    %c0_i32 = arith.constant 0 : i32
    %c0_i32_0 = arith.constant 0 : i32
    %c0_i32_1 = arith.constant 0 : i32
    return %arg0, %c0_i32, %c0_i32_0 : i32, i32, i32
  }
  func.func @transform_1(%arg0: i32) -> (i32, i32, i32) {
    %c0_i32 = arith.constant 0 : i32
    %c0_i32_0 = arith.constant 0 : i32
    %c0_i32_1 = arith.constant 0 : i32
    %c0_i32_2 = arith.constant 0 : i32
    return %c0_i32, %c0_i32_0, %c0_i32_1 : i32, i32, i32
  }
  func.func @transform_2(%arg0: i32) -> (i32, i32) {
    %c0_i32 = arith.constant 0 : i32
    %c0_i32_0 = arith.constant 0 : i32
    %c0_i32_1 = arith.constant 0 : i32
    return %c0_i32, %c0_i32_0 : i32, i32
  }
  func.func @transform_3(%arg0: i32) -> (i32, i32) {
    %c0_i32 = arith.constant 0 : i32
    %c0_i32_0 = arith.constant 0 : i32
    %c0_i32_1 = arith.constant 0 : i32
    return %c0_i32, %c0_i32_0 : i32, i32
  }
  func.func @transform_4(%arg0: i32) -> (i32, i32, i32) {
    %c0_i32 = arith.constant 0 : i32
    %c0_i32_0 = arith.constant 0 : i32
    %c0_i32_1 = arith.constant 0 : i32
    return %arg0, %c0_i32, %c0_i32_0 : i32, i32, i32
  }
  func.func @transform_5(%arg0: i32) -> (i32, i32, i32) {
    %c0_i32 = arith.constant 0 : i32
    %c0_i32_0 = arith.constant 0 : i32
    %c0_i32_1 = arith.constant 0 : i32
    return %arg0, %c0_i32, %c0_i32_0 : i32, i32, i32
  }
}

module attributes {stable_mosaic.version = 11 : i64} {
  func.func @stage3_kernel(%arg0: i32, %arg1: memref<128x128xbf16, #tpu.memory_space<vmem>>, %arg2: memref<128x128xbf16, #tpu.memory_space<vmem>>, %arg3: memref<1x128xf32, #tpu.memory_space<vmem>>, %arg4: memref<1x128xf32, #tpu.memory_space<vmem>>, %arg5: memref<128x128xbf16, #tpu.memory_space<vmem>>, %arg6: memref<1x2x128xf32, #tpu.memory_space<vmem>>) attributes {dimension_semantics = [#tpu.dimension_semantics<parallel>], iteration_bounds = array<i64: 1>, scalar_prefetch = 0 : i64, scratch_operands = 0 : i64, tpu.core_type = #tpu.core_type<tc>, window_params = [{transform_indices = @transform_0, window_bounds = array<i64: 128, 128>}, {pipeline_mode = #tpu.pipeline_mode<synchronous>, transform_indices = @transform_1, window_bounds = array<i64: 128, 128>}, {pipeline_mode = #tpu.pipeline_mode<synchronous>, transform_indices = @transform_2, window_bounds = array<i64: 1, 128>}, {pipeline_mode = #tpu.pipeline_mode<synchronous>, transform_indices = @transform_3, window_bounds = array<i64: 1, 128>}, {transform_indices = @transform_4, window_bounds = array<i64: 128, 128>}, {transform_indices = @transform_5, window_bounds = array<i64: 1, 2, 128>}]} {
    %c0 = arith.constant 0 : index
    %c0_0 = arith.constant 0 : index
    %0 = vector.load %arg1[%c0, %c0_0] : memref<128x128xbf16, #tpu.memory_space<vmem>>, vector<128x128xbf16>
    %1 = arith.extf %0 : vector<128x128xbf16> to vector<128x128xf32>
    %c0_1 = arith.constant 0 : index
    %c0_2 = arith.constant 0 : index
    %2 = vector.load %arg3[%c0_1, %c0_2] : memref<1x128xf32, #tpu.memory_space<vmem>>, vector<1x128xf32>
    %3 = vector.broadcast %2 : vector<1x128xf32> to vector<128x128xf32>
    %4 = arith.mulf %1, %3 : vector<128x128xf32>
    %c0_3 = arith.constant 0 : index
    %c0_4 = arith.constant 0 : index
    %5 = vector.load %arg4[%c0_3, %c0_4] : memref<1x128xf32, #tpu.memory_space<vmem>>, vector<1x128xf32>
    %6 = vector.broadcast %5 : vector<1x128xf32> to vector<128x128xf32>
    %7 = arith.addf %4, %6 : vector<128x128xf32>
    %cst = arith.constant 0.000000e+00 : f32
    %8 = vector.broadcast %cst : f32 to vector<128x128xf32>
    %9 = arith.maximumf %7, %8 : vector<128x128xf32>
    %10 = arith.truncf %9 : vector<128x128xf32> to vector<128x128xbf16>
    %c0_5 = arith.constant 0 : index
    %c0_6 = arith.constant 0 : index
    %11 = vector.load %arg2[%c0_5, %c0_6] : memref<128x128xbf16, #tpu.memory_space<vmem>>, vector<128x128xbf16>
    %cst_7 = arith.constant dense<0.000000e+00> : vector<128x128xf32>
    %12 = tpu.matmul %10, %11, %cst_7 {dimension_numbers = #tpu.dot_dimension_numbers<[1], [0], [0], [1], [0, 0, 1, 1], [], []>} : vector<128x128xbf16>, vector<128x128xbf16>, vector<128x128xf32> -> vector<128x128xf32>
    %13 = arith.truncf %12 : vector<128x128xf32> to vector<128x128xbf16>
    %c0_8 = arith.constant 0 : index
    %c0_9 = arith.constant 0 : index
    %14 = vector.load %arg5[%c0_8, %c0_9] : memref<128x128xbf16, #tpu.memory_space<vmem>>, vector<128x128xbf16>
    tpu.vector_store %arg5[%c0_8, %c0_9], %13 {strides = array<i32>} : memref<128x128xbf16, #tpu.memory_space<vmem>>, vector<128x128xbf16>,
    %cst_10 = arith.constant dense<0.000000e+00> : vector<128xf32>
    %15 = vector.multi_reduction <add>, %12, %cst_10 [0] : vector<128x128xf32> to vector<128xf32>
    %16 = vector.shape_cast %15 : vector<128xf32> to vector<1x128xf32>
    %17 = arith.mulf %12, %12 : vector<128x128xf32>
    %cst_11 = arith.constant dense<0.000000e+00> : vector<128xf32>
    %18 = vector.multi_reduction <add>, %17, %cst_11 [0] : vector<128x128xf32> to vector<128xf32>
    %19 = vector.shape_cast %18 : vector<128xf32> to vector<1x128xf32>
    %20 = tpu.concatenate %16, %19 in 0 : vector<1x128xf32>, vector<1x128xf32> -> vector<2x128xf32>
    %c0_12 = arith.constant 0 : index
    %c0_13 = arith.constant 0 : index
    %c0_14 = arith.constant 0 : index
    %21 = vector.load %arg6[%c0_12, %c0_13, %c0_14] : memref<1x2x128xf32, #tpu.memory_space<vmem>>, vector<1x2x128xf32>
    %22 = vector.shape_cast %21 : vector<1x2x128xf32> to vector<2x128xf32>
    %23 = vector.shape_cast %20 : vector<2x128xf32> to vector<1x2x128xf32>
    tpu.vector_store %arg6[%c0_12, %c0_13, %c0_14], %23 {strides = array<i32>} : memref<1x2x128xf32, #tpu.memory_space<vmem>>, vector<1x2x128xf32>,
    return
  }
  func.func @transform_0(%arg0: i32) -> (i32, i32) {
    %c0_i32 = arith.constant 0 : i32
    %c0_i32_0 = arith.constant 0 : i32
    return %arg0, %c0_i32 : i32, i32
  }
  func.func @transform_1(%arg0: i32) -> (i32, i32) {
    %c0_i32 = arith.constant 0 : i32
    %c0_i32_0 = arith.constant 0 : i32
    %c0_i32_1 = arith.constant 0 : i32
    return %c0_i32, %c0_i32_0 : i32, i32
  }
  func.func @transform_2(%arg0: i32) -> (i32, i32) {
    %c0_i32 = arith.constant 0 : i32
    %c0_i32_0 = arith.constant 0 : i32
    %c0_i32_1 = arith.constant 0 : i32
    return %c0_i32, %c0_i32_0 : i32, i32
  }
  func.func @transform_3(%arg0: i32) -> (i32, i32) {
    %c0_i32 = arith.constant 0 : i32
    %c0_i32_0 = arith.constant 0 : i32
    %c0_i32_1 = arith.constant 0 : i32
    return %c0_i32, %c0_i32_0 : i32, i32
  }
  func.func @transform_4(%arg0: i32) -> (i32, i32) {
    %c0_i32 = arith.constant 0 : i32
    %c0_i32_0 = arith.constant 0 : i32
    return %arg0, %c0_i32 : i32, i32
  }
  func.func @transform_5(%arg0: i32) -> (i32, i32, i32) {
    %c0_i32 = arith.constant 0 : i32
    %c0_i32_0 = arith.constant 0 : i32
    %c0_i32_1 = arith.constant 0 : i32
    return %arg0, %c0_i32, %c0_i32_0 : i32, i32, i32
  }
}

module attributes {stable_mosaic.version = 11 : i64} {
  func.func @residual_kernel(%arg0: i32, %arg1: memref<128x128xbf16, #tpu.memory_space<vmem>>, %arg2: memref<128x128xbf16, #tpu.memory_space<vmem>>, %arg3: memref<1x128xf32, #tpu.memory_space<vmem>>, %arg4: memref<1x128xf32, #tpu.memory_space<vmem>>, %arg5: memref<128x128xf32, #tpu.memory_space<vmem>>) attributes {dimension_semantics = [#tpu.dimension_semantics<parallel>], iteration_bounds = array<i64: 1>, scalar_prefetch = 0 : i64, scratch_operands = 0 : i64, tpu.core_type = #tpu.core_type<tc>, window_params = [{transform_indices = @transform_0, window_bounds = array<i64: 128, 128>}, {transform_indices = @transform_1, window_bounds = array<i64: 128, 128>}, {pipeline_mode = #tpu.pipeline_mode<synchronous>, transform_indices = @transform_2, window_bounds = array<i64: 1, 128>}, {pipeline_mode = #tpu.pipeline_mode<synchronous>, transform_indices = @transform_3, window_bounds = array<i64: 1, 128>}, {transform_indices = @transform_4, window_bounds = array<i64: 128, 128>}]} {
    %c0 = arith.constant 0 : index
    %c0_0 = arith.constant 0 : index
    %0 = vector.load %arg1[%c0, %c0_0] : memref<128x128xbf16, #tpu.memory_space<vmem>>, vector<128x128xbf16>
    %1 = arith.extf %0 : vector<128x128xbf16> to vector<128x128xf32>
    %c0_1 = arith.constant 0 : index
    %c0_2 = arith.constant 0 : index
    %2 = vector.load %arg3[%c0_1, %c0_2] : memref<1x128xf32, #tpu.memory_space<vmem>>, vector<1x128xf32>
    %3 = vector.broadcast %2 : vector<1x128xf32> to vector<128x128xf32>
    %4 = arith.mulf %1, %3 : vector<128x128xf32>
    %c0_3 = arith.constant 0 : index
    %c0_4 = arith.constant 0 : index
    %5 = vector.load %arg4[%c0_3, %c0_4] : memref<1x128xf32, #tpu.memory_space<vmem>>, vector<1x128xf32>
    %6 = vector.broadcast %5 : vector<1x128xf32> to vector<128x128xf32>
    %7 = arith.addf %4, %6 : vector<128x128xf32>
    %c0_5 = arith.constant 0 : index
    %c0_6 = arith.constant 0 : index
    %8 = vector.load %arg2[%c0_5, %c0_6] : memref<128x128xbf16, #tpu.memory_space<vmem>>, vector<128x128xbf16>
    %9 = arith.extf %8 : vector<128x128xbf16> to vector<128x128xf32>
    %10 = arith.addf %7, %9 : vector<128x128xf32>
    %cst = arith.constant 0.000000e+00 : f32
    %11 = vector.broadcast %cst : f32 to vector<128x128xf32>
    %12 = arith.maximumf %10, %11 : vector<128x128xf32>
    %c0_7 = arith.constant 0 : index
    %c0_8 = arith.constant 0 : index
    %13 = vector.load %arg5[%c0_7, %c0_8] : memref<128x128xf32, #tpu.memory_space<vmem>>, vector<128x128xf32>
    tpu.vector_store %arg5[%c0_7, %c0_8], %12 {strides = array<i32>} : memref<128x128xf32, #tpu.memory_space<vmem>>, vector<128x128xf32>,
    return
  }
  func.func @transform_0(%arg0: i32) -> (i32, i32) {
    %c0_i32 = arith.constant 0 : i32
    %c0_i32_0 = arith.constant 0 : i32
    return %arg0, %c0_i32 : i32, i32
  }
  func.func @transform_1(%arg0: i32) -> (i32, i32) {
    %c0_i32 = arith.constant 0 : i32
    %c0_i32_0 = arith.constant 0 : i32
    return %arg0, %c0_i32 : i32, i32
  }
  func.func @transform_2(%arg0: i32) -> (i32, i32) {
    %c0_i32 = arith.constant 0 : i32
    %c0_i32_0 = arith.constant 0 : i32
    %c0_i32_1 = arith.constant 0 : i32
    return %c0_i32, %c0_i32_0 : i32, i32
  }
  func.func @transform_3(%arg0: i32) -> (i32, i32) {
    %c0_i32 = arith.constant 0 : i32
    %c0_i32_0 = arith.constant 0 : i32
    %c0_i32_1 = arith.constant 0 : i32
    return %c0_i32, %c0_i32_0 : i32, i32
  }
  func.func @transform_4(%arg0: i32) -> (i32, i32) {
    %c0_i32 = arith.constant 0 : i32
    %c0_i32_0 = arith.constant 0 : i32
    return %arg0, %c0_i32 : i32, i32
  }
}

</mosaic_0001>

<bundles_post_ra>
// kernel: bottleneck_forward.4
= control target key start
LH: loop header
LB: loop body
LE: loop exit
PB: predicated region body
PF: predicated region fallthrough
CT: control target
= control target key end

     0   :  { %vm377_vm0 = vcmask 1040384   ;;  %s658_s1 = inlined_call_operand.vmem [shape: bf16[128,128], index: 1, kind: input, shape index: {}]   ;;  %s659_s0 = inlined_call_operand.vmem [shape: bf16[128,128], index: 0, kind: input, shape index: {}]   ;;  %s660_s2 = inlined_call_operand.vmem [shape: bf16[128,128], index: 2, kind: output, shape index: {0}]   ;;  %s661_s3 = inlined_call_operand.vmem [shape: f32[1,2,128], index: 3, kind: output, shape index: {1}]  }
   0x1   :  { %v547_v0 = vld [vmem:[%s658_s1] sm:$0xff]   ;;  %v548_v1 = vld [vmem:[%s658_s1 + $0x8] sm:$0xff]   ;;  %v549_v2 = vld [vmem:[%s658_s1 + $0x10] sm:$0xff]  }
   0x2   :  { %499 = vmatprep.subr.bf16.mxu0 %v547_v0  ;;  %531 = vmatprep.subr.bf16.mxu1 %v547_v0  ;;  %v550_v3 = vld [vmem:[%s658_s1 + $0x18] sm:$0xff]   ;;  %v555_v4 = vld [vmem:[%s659_s0] sm:$0xff]   ;;  %v552_v7 = vld [vmem:[%s658_s1 + $0x28] sm:$0xff]  }
   0x3   :  { %500 = vmatpush3.bf16.msra.mxu0 %v547_v0  ;;  %539 = vmatpush3.bf16.msra.mxu1 %v547_v0  ;;  %v551_v5 = vld [vmem:[%s658_s1 + $0x20] sm:$0xff]   ;;  %v553_v8 = vld [vmem:[%s658_s1 + $0x30] sm:$0xff]   ;;  %v554_v9 = vld [vmem:[%s658_s1 + $0x38] sm:$0xff]  }
   0x4   :  { %501 = vmatprep.subr.bf16.mxu0 %v548_v1  ;;  %532 = vmatprep.subr.bf16.mxu1 %v548_v1  ;;  %v559_v6 = vld [vmem:[%s659_s0 + $0x20] sm:$0xff]   ;;  %v556_v10 = vld [vmem:[%s659_s0 + $0x8] sm:$0xff]   ;;  %v557_v12 = vld [vmem:[%s659_s0 + $0x10] sm:$0xff]  }
   0x5   :  { %515 = vmatprep.mubr.bf16.mxu0 %v555_v4  ;;  %523 = vmatprep.mubr.bf16.mxu1 %v559_v6  ;;  %v560_v11 = vld [vmem:[%s659_s0 + $0x28] sm:$0xff]   ;;  %v561_v13 = vld [vmem:[%s659_s0 + $0x30] sm:$0xff]   ;;  %v558_v14 = vld [vmem:[%s659_s0 + $0x18] sm:$0xff]  }
   0x6   :  { %v562_v15 = vld [vmem:[%s659_s0 + $0x38] sm:$0xff]  }
   0x7   :  { %502 = vmatpush3.bf16.msra.mxu0 %v548_v1  ;;  %540 = vmatpush3.bf16.msra.mxu1 %v548_v1 }
   0x8   :  { %503 = vmatprep.subr.bf16.mxu0 %v549_v2  ;;  %533 = vmatprep.subr.bf16.mxu1 %v549_v2 }
   0xb   :  { %504 = vmatpush3.bf16.msra.mxu0 %v549_v2  ;;  %541 = vmatpush3.bf16.msra.mxu1 %v549_v2 }
   0xc   :  { %505 = vmatprep.subr.bf16.mxu0 %v550_v3  ;;  %534 = vmatprep.subr.bf16.mxu1 %v550_v3 }
   0xf   :  { %506 = vmatpush3.bf16.msra.mxu0 %v550_v3  ;;  %542 = vmatpush3.bf16.msra.mxu1 %v550_v3 }
  0x10   :  { %507 = vmatprep.subr.bf16.mxu0 %v551_v5  ;;  %535 = vmatprep.subr.bf16.mxu1 %v551_v5 }
  0x13   :  { %508 = vmatpush3.bf16.msra.mxu0 %v551_v5  ;;  %543 = vmatpush3.bf16.msra.mxu1 %v551_v5 }
  0x14   :  { %509 = vmatprep.subr.bf16.mxu0 %v552_v7  ;;  %536 = vmatprep.subr.bf16.mxu1 %v552_v7 }
  0x17   :  { %510 = vmatpush3.bf16.msra.mxu0 %v552_v7  ;;  %544 = vmatpush3.bf16.msra.mxu1 %v552_v7 }
  0x18   :  { %511 = vmatprep.subr.bf16.mxu0 %v553_v8  ;;  %537 = vmatprep.subr.bf16.mxu1 %v553_v8 }
  0x1b   :  { %512 = vmatpush3.bf16.msra.mxu0 %v553_v8  ;;  %545 = vmatpush3.bf16.msra.mxu1 %v553_v8 }
  0x1c   :  { %513 = vmatprep.subr.bf16.mxu0 %v554_v9  ;;  %538 = vmatprep.subr.bf16.mxu1 %v554_v9 }
  0x1f   :  { %514 = vmatpush3.bf16.msra.mxu0 %v554_v9  ;;  %546 = vmatpush3.bf16.msra.mxu1 %v554_v9 }
  0x22   :  { %516 = vmatmul.mubr.bf16.vlgmr.msra.gmra.mrb[0].mxu0 %v556_v10  ;;  %524 = vmatmul.mubr.bf16.vlgmr.msra.gmra.mrb[0].mxu1 %v560_v11 }
  0x23   :  { %519 = vmatprep.mubr.bf16.mxu0 %v557_v12  ;;  %527 = vmatprep.mubr.bf16.mxu1 %v561_v13 }
  0x2a   :  { %520 = vmatmul.mubr.bf16.gmra.mrb[4].mxu0 %v558_v14  ;;  %528 = vmatmul.mubr.bf16.gmra.mrb[4].mxu1 %v562_v15 }
  0xf5   :  { %v517_v16 = vpop.f32.mrb[0].mxu0  ;;  %v525_v17 = vpop.f32.mrb[0].mxu1 }
  0xf6   :  { %v176_v18 = vpop.f32.mrb[1].mxu0  ;;  %v208_v19 = vpop.f32.mrb[1].mxu1  ;;  %v342_v31 = vmul.f32 %v517_v16, %v517_v16  ;;  %v350_v3 = vmul.f32 %v525_v17, %v525_v17 }
  0xf7   :  { %v518_v20 = vpop.f32.mrb[2].mxu0  ;;  %v526_v21 = vpop.f32.mrb[2].mxu1  ;;  %v340_v22 = vmul.f32 %v176_v18, %v176_v18  ;;  %v348_v61 = vmul.f32 %v208_v19, %v208_v19 }
  0xf8   :  { %v444_v23 = vpack.c.bf16 %v518_v20, %v517_v16  ;;  %v179_v24 = vpop.f32.mrb[3].mxu0  ;;  %v464_v25 = vpack.c.bf16 %v526_v21, %v525_v17  ;;  %v211_v26 = vpop.f32.mrb[3].mxu1  ;;  %v343_v34 = vmul.f32 %v518_v20, %v518_v20  ;;  %v351_v6 = vmul.f32 %v526_v21, %v526_v21 }
  0xf9   :  { %v439_v27 = vpack.c.bf16 %v179_v24, %v176_v18  ;;  %v319_v28 = vadd.f32 %v179_v24, %v176_v18  ;;  %v341_v29 = vmul.f32 %v179_v24, %v179_v24  ;;  %v459_v30 = vpack.c.bf16 %v211_v26, %v208_v19 }
  0xfa   :  { %476 = vst [vmem:[%s660_s2 + $0x8] sm:$0xff] %v444_v23   ;;  %480 = vst [vmem:[%s660_s2 + $0x28] sm:$0xff] %v464_v25   ;;  %v349_v2 = vmul.f32 %v211_v26, %v211_v26 }
  0xfb   :  { %440 = vst [vmem:[%s660_s2] sm:$0xff] %v439_v27   ;;  %v320_v32 = vadd.f32 %v517_v16, %v319_v28  ;;  %v356_v33 = vadd.f32 %v341_v29, %v340_v22  ;;  %479 = vst [vmem:[%s660_s2 + $0x20] sm:$0xff] %v459_v30  }
  0xfd   :  { %v357_v35 = vadd.f32 %v356_v33, %v342_v31  ;;  %v521_v36 = vpop.f32.mrb[4].mxu0  ;;  %v321_v37 = vadd.f32 %v518_v20, %v320_v32  ;;  %v529_v38 = vpop.f32.mrb[4].mxu1 }
  0xfe   :  { %v192_v39 = vpop.f32.mrb[5].mxu0  ;;  %v224_v40 = vpop.f32.mrb[5].mxu1  ;;  %v346_v55 = vmul.f32 %v521_v36, %v521_v36  ;;  %v354_v15 = vmul.f32 %v529_v38, %v529_v38 }
  0xff   :  { %v322_v41 = vadd.f32 %v321_v37, %v192_v39  ;;  %v344_v42 = vmul.f32 %v192_v39, %v192_v39  ;;  %v358_v43 = vadd.f32 %v357_v35, %v343_v34  ;;  %v522_v44 = vpop.f32.mrb[6].mxu0  ;;  %v530_v45 = vpop.f32.mrb[6].mxu1  ;;  %v352_v9 = vmul.f32 %v224_v40, %v224_v40 }
 0x100   :  { %v454_v46 = vpack.c.bf16 %v522_v44, %v521_v36  ;;  %v195_v47 = vpop.f32.mrb[7].mxu0  ;;  %v474_v48 = vpack.c.bf16 %v530_v45, %v529_v38  ;;  %v227_v49 = vpop.f32.mrb[7].mxu1  ;;  %v347_v58 = vmul.f32 %v522_v44, %v522_v44 }
 0x101   :  { %v359_v50 = vadd.f32 %v358_v43, %v344_v42  ;;  %v449_v51 = vpack.c.bf16 %v195_v47, %v192_v39  ;;  %v323_v52 = vadd.f32 %v322_v41, %v195_v47  ;;  %v345_v53 = vmul.f32 %v195_v47, %v195_v47 }
 0x102   :  { %478 = vst [vmem:[%s660_s2 + $0x18] sm:$0xff] %v454_v46   ;;  %482 = vst [vmem:[%s660_s2 + $0x38] sm:$0xff] %v474_v48   ;;  %v469_v54 = vpack.c.bf16 %v227_v49, %v224_v40  ;;  %v353_v14 = vmul.f32 %v227_v49, %v227_v49 }
 0x103   :  { %477 = vst [vmem:[%s660_s2 + $0x10] sm:$0xff] %v449_v51   ;;  %v324_v56 = vadd.f32 %v521_v36, %v323_v52  ;;  %v360_v57 = vadd.f32 %v359_v50, %v345_v53 }
 0x104   :  { %481 = vst [vmem:[%s660_s2 + $0x30] sm:$0xff] %v469_v54  }
 0x105   :  { %v361_v59 = vadd.f32 %v360_v57, %v346_v55  ;;  %v325_v60 = vadd.f32 %v522_v44, %v324_v56 }
 0x107   :  { %v326_v62 = vadd.f32 %v325_v60, %v208_v19  ;;  %v362_v63 = vadd.f32 %v361_v59, %v347_v58  ;;  %v355_v19 = vmul.f32 %v530_v45, %v530_v45 }
 0x109   :  { %v363_v0 = vadd.f32 %v362_v63, %v348_v61  ;;  %v327_v1 = vadd.f32 %v326_v62, %v211_v26 }
 0x10b   :  { %v328_v4 = vadd.f32 %v525_v17, %v327_v1  ;;  %v364_v5 = vadd.f32 %v363_v0, %v349_v2 }
 0x10d   :  { %v365_v7 = vadd.f32 %v364_v5, %v350_v3  ;;  %v329_v8 = vadd.f32 %v526_v21, %v328_v4 }
 0x10f   :  { %v330_v10 = vadd.f32 %v329_v8, %v224_v40  ;;  %v366_v11 = vadd.f32 %v365_v7, %v351_v6 }
 0x111   :  { %v367_v12 = vadd.f32 %v366_v11, %v352_v9  ;;  %v331_v13 = vadd.f32 %v330_v10, %v227_v49 }
 0x113   :  { %v332_v16 = vadd.f32 %v529_v38, %v331_v13  ;;  %v368_v18 = vadd.f32 %v367_v12, %v353_v14 }
 0x115   :  { %v333_v20 = vadd.f32 %v530_v45, %v332_v16  ;;  %v369_v22 = vadd.f32 %v368_v18, %v354_v15 }
 0x117   :  { %v334_v23 = vrot.slane %v333_v20, 4  ;;  %v370_v24 = vadd.f32 %v369_v22, %v355_v19 }
 0x119   :  { %v335_v25 = vadd.f32 %v334_v23, %v333_v20  ;;  %v371_v17 = vrot.slane %v370_v24, 4 }
 0x11b   :  { %v336_v26 = vrot.slane %v335_v25, 2  ;;  %v372_v27 = vadd.f32 %v371_v17, %v370_v24 }
 0x11d   :  { %v337_v28 = vadd.f32 %v336_v26, %v335_v25  ;;  %v373_v21 = vrot.slane %v372_v27, 2 }
 0x11f   :  { %v338_v29 = vrot.slane %v337_v28, 1  ;;  %v374_v30 = vadd.f32 %v373_v21, %v372_v27 }
 0x121   :  { %v375_v31 = vrot.slane %v374_v30, 1  ;;  %v339_v32 = vadd.f32 %v338_v29, %v337_v28 }
 0x123   :  { %v376_v33 = vadd.f32 %v375_v31, %v374_v30 }
 0x125   :  { %v378_v34 = vsel %vm377_vm0, %v339_v32, %v376_v33 }
 0x126   :  { %379 = vst [vmem:[%s661_s3] sm:$0x3] %v378_v34 }

// kernel: bottleneck_forward.6
= control target key start
LH: loop header
LB: loop body
LE: loop exit
PB: predicated region body
PF: predicated region fallthrough
CT: control target
= control target key end

     0   :  { %vm421_vm0 = vcmask 1040384   ;;  %s779_s1 = inlined_call_operand.vmem [shape: bf16[128,128], index: 1, kind: input, shape index: {}]   ;;  %s780_s0 = inlined_call_operand.vmem [shape: bf16[128,128], index: 0, kind: input, shape index: {}]   ;;  %s781_s2 = inlined_call_operand.vmem [shape: f32[1,128], index: 2, kind: input, shape index: {}]   ;;  %s782_s3 = inlined_call_operand.vmem [shape: f32[1,128], index: 3, kind: input, shape index: {}]   ;;  %s783_s4 = inlined_call_operand.vmem [shape: bf16[128,128], index: 4, kind: output, shape index: {0}]   ;;  %s784_s5 = inlined_call_operand.vmem [shape: f32[1,2,128], index: 5, kind: output, shape index: {1}]  }
   0x1   :  { %v624_v0 = vld [vmem:[%s779_s1] sm:$0xff]   ;;  %v625_v1 = vld [vmem:[%s779_s1 + $0x8] sm:$0xff]   ;;  %v626_v2 = vld [vmem:[%s779_s1 + $0x10] sm:$0xff]  }
   0x2   :  { %576 = vmatprep.subr.bf16.mxu0 %v624_v0  ;;  %608 = vmatprep.subr.bf16.mxu1 %v624_v0  ;;  %v627_v3 = vld [vmem:[%s779_s1 + $0x18] sm:$0xff]   ;;  %v475_v4 = vld [vmem:[%s780_s0] sm:$0xff]   ;;  %v546_v8 = vld [vmem:[%s780_s0 + $0x8] sm:$0xff]  }
   0x3   :  { %577 = vmatpush3.bf16.msra.mxu0 %v624_v0  ;;  %616 = vmatpush3.bf16.msra.mxu1 %v624_v0  ;;  %v680_v5 = vld [vmem:[%s781_s2] ss:$0 sm:$0xff]  ;;  %v476_v6 = vunpack.c.l.bf16 %v475_v4  ;;  %v477_v7 = vunpack.c.h.bf16 %v475_v4  ;;  %v547_v9 = vld [vmem:[%s780_s0 + $0x10] sm:$0xff]   ;;  %v480_v11 = vunpack.c.l.bf16 %v546_v8  ;;  %v481_v14 = vunpack.c.h.bf16 %v546_v8  ;;  %v548_v22 = vld [vmem:[%s780_s0 + $0x18] sm:$0xff]  }
   0x4   :  { %578 = vmatprep.subr.bf16.mxu0 %v625_v1  ;;  %609 = vmatprep.subr.bf16.mxu1 %v625_v1  ;;  %v691_v10 = vld [vmem:[%s782_s3] ss:$0 sm:$0xff]  ;;  %v484_v17 = vunpack.c.l.bf16 %v547_v9  ;;  %v485_v21 = vunpack.c.h.bf16 %v547_v9  ;;  %v550_v27 = vld [vmem:[%s780_s0 + $0x28] sm:$0xff]   ;;  %v551_v30 = vld [vmem:[%s780_s0 + $0x30] sm:$0xff]   ;;  %v488_v32 = vunpack.c.l.bf16 %v548_v22  ;;  %v489_v33 = vunpack.c.h.bf16 %v548_v22 }
   0x5   :  { %v59_v12 = vmul.f32 %v476_v6, %v680_v5  ;;  %v60_v13 = vmul.f32 %v477_v7, %v680_v5  ;;  %v549_v15 = vld [vmem:[%s780_s0 + $0x20] sm:$0xff]   ;;  %v61_v20 = vmul.f32 %v480_v11, %v680_v5  ;;  %v62_v26 = vmul.f32 %v481_v14, %v680_v5  ;;  %v629_v28 = vld [vmem:[%s779_s1 + $0x28] sm:$0xff]   ;;  %v552_v39 = vld [vmem:[%s780_s0 + $0x38] sm:$0xff]  }
   0x6   :  { %v628_v16 = vld [vmem:[%s779_s1 + $0x20] sm:$0xff]   ;;  %v492_v23 = vunpack.c.l.bf16 %v549_v15  ;;  %v63_v29 = vmul.f32 %v484_v17, %v680_v5  ;;  %v493_v34 = vunpack.c.h.bf16 %v549_v15  ;;  %v64_v36 = vmul.f32 %v485_v21, %v680_v5  ;;  %v630_v44 = vld [vmem:[%s779_s1 + $0x30] sm:$0xff]   ;;  %v631_v61 = vld [vmem:[%s779_s1 + $0x38] sm:$0xff]  }
   0x7   :  { %579 = vmatpush3.bf16.msra.mxu0 %v625_v1  ;;  %617 = vmatpush3.bf16.msra.mxu1 %v625_v1  ;;  %v82_v18 = vadd.f32 %v691_v10, %v59_v12  ;;  %v83_v19 = vadd.f32 %v691_v10, %v60_v13  ;;  %v84_v35 = vadd.f32 %v691_v10, %v61_v20  ;;  %v496_v38 = vunpack.c.l.bf16 %v550_v27 }
   0x8   :  { %580 = vmatprep.subr.bf16.mxu0 %v626_v2  ;;  %610 = vmatprep.subr.bf16.mxu1 %v626_v2  ;;  %v67_v37 = vmul.f32 %v492_v23, %v680_v5  ;;  %v85_v40 = vadd.f32 %v691_v10, %v62_v26  ;;  %v68_v41 = vmul.f32 %v493_v34, %v680_v5  ;;  %v497_v42 = vunpack.c.h.bf16 %v550_v27 }
   0x9   :  { %v98_v24 = vmax.f32 %v82_v18, 0.0  ;;  %v99_v25 = vmax.f32 %v83_v19, 0.0  ;;  %v500_v43 = vunpack.c.l.bf16 %v551_v30  ;;  %v86_v45 = vadd.f32 %v691_v10, %v63_v29 }
   0xa   :  { %v90_v46 = vadd.f32 %v691_v10, %v67_v37  ;;  %v69_v47 = vmul.f32 %v496_v38, %v680_v5  ;;  %v501_v48 = vunpack.c.h.bf16 %v551_v30  ;;  %v91_v49 = vadd.f32 %v691_v10, %v68_v41 }
   0xb   :  { %581 = vmatpush3.bf16.msra.mxu0 %v626_v2  ;;  %618 = vmatpush3.bf16.msra.mxu1 %v626_v2  ;;  %v114_v31 = vpack.c.bf16 %v99_v25, %v98_v24  ;;  %v70_v50 = vmul.f32 %v497_v42, %v680_v5  ;;  %v71_v51 = vmul.f32 %v500_v43, %v680_v5  ;;  %v504_v52 = vunpack.c.l.bf16 %v552_v39 }
   0xc   :  { %582 = vmatprep.subr.bf16.mxu0 %v627_v3  ;;  %611 = vmatprep.subr.bf16.mxu1 %v627_v3  ;;  %v106_v53 = vmax.f32 %v90_v46, 0.0  ;;  %v92_v54 = vadd.f32 %v691_v10, %v69_v47  ;;  %v72_v55 = vmul.f32 %v501_v48, %v680_v5  ;;  %v505_v56 = vunpack.c.h.bf16 %v552_v39 }
   0xd   :  { %592 = vmatprep.mubr.bf16.mxu0 %v114_v31  ;;  %v87_v57 = vadd.f32 %v691_v10, %v64_v36  ;;  %v107_v58 = vmax.f32 %v91_v49, 0.0  ;;  %v93_v59 = vadd.f32 %v691_v10, %v70_v50  ;;  %v94_v60 = vadd.f32 %v691_v10, %v71_v51 }
   0xe   :  { %v65_v62 = vmul.f32 %v488_v32, %v680_v5  ;;  %v95_v63 = vadd.f32 %v691_v10, %v72_v55  ;;  %v100_v0 = vmax.f32 %v84_v35, 0.0  ;;  %v101_v1 = vmax.f32 %v85_v40, 0.0 }
   0xf   :  { %583 = vmatpush3.bf16.msra.mxu0 %v627_v3  ;;  %619 = vmatpush3.bf16.msra.mxu1 %v627_v3  ;;  %v66_v2 = vmul.f32 %v489_v33, %v680_v5  ;;  %v118_v3 = vpack.c.bf16 %v107_v58, %v106_v53  ;;  %v108_v4 = vmax.f32 %v92_v54, 0.0  ;;  %v109_v6 = vmax.f32 %v93_v59, 0.0 }
  0x10   :  { %584 = vmatprep.subr.bf16.mxu0 %v628_v16  ;;  %612 = vmatprep.subr.bf16.mxu1 %v628_v16  ;;  %v73_v7 = vmul.f32 %v504_v52, %v680_v5  ;;  %v74_v8 = vmul.f32 %v505_v56, %v680_v5  ;;  %v102_v9 = vmax.f32 %v86_v45, 0.0  ;;  %v103_v11 = vmax.f32 %v87_v57, 0.0 }
  0x11   :  { %v110_v12 = vmax.f32 %v94_v60, 0.0  ;;  %v111_v13 = vmax.f32 %v95_v63, 0.0  ;;  %v88_v14 = vadd.f32 %v691_v10, %v65_v62  ;;  %v89_v15 = vadd.f32 %v691_v10, %v66_v2  ;;  %600 = vmatprep.mubr.bf16.mxu1 %v118_v3 }
  0x12   :  { %v119_v17 = vpack.c.bf16 %v109_v6, %v108_v4  ;;  %v96_v18 = vadd.f32 %v691_v10, %v73_v7  ;;  %v97_v19 = vadd.f32 %v691_v10, %v74_v8  ;;  %v116_v5 = vpack.c.bf16 %v103_v11, %v102_v9 }
  0x13   :  { %585 = vmatpush3.bf16.msra.mxu0 %v628_v16  ;;  %620 = vmatpush3.bf16.msra.mxu1 %v628_v16  ;;  %v115_v16 = vpack.c.bf16 %v101_v1, %v100_v0  ;;  %v120_v20 = vpack.c.bf16 %v111_v13, %v110_v12  ;;  %v104_v21 = vmax.f32 %v88_v14, 0.0  ;;  %v105_v22 = vmax.f32 %v89_v15, 0.0 }
  0x14   :  { %586 = vmatprep.subr.bf16.mxu0 %v629_v28  ;;  %613 = vmatprep.subr.bf16.mxu1 %v629_v28  ;;  %v112_v23 = vmax.f32 %v96_v18, 0.0  ;;  %v113_v24 = vmax.f32 %v97_v19, 0.0 }
  0x15   :  { %v117_v25 = vpack.c.bf16 %v105_v22, %v104_v21 }
  0x16   :  { %v121_v26 = vpack.c.bf16 %v113_v24, %v112_v23 }
  0x17   :  { %587 = vmatpush3.bf16.msra.mxu0 %v629_v28  ;;  %621 = vmatpush3.bf16.msra.mxu1 %v629_v28 }
  0x18   :  { %588 = vmatprep.subr.bf16.mxu0 %v630_v44  ;;  %614 = vmatprep.subr.bf16.mxu1 %v630_v44 }
  0x1b   :  { %589 = vmatpush3.bf16.msra.mxu0 %v630_v44  ;;  %622 = vmatpush3.bf16.msra.mxu1 %v630_v44 }
  0x1c   :  { %590 = vmatprep.subr.bf16.mxu0 %v631_v61  ;;  %615 = vmatprep.subr.bf16.mxu1 %v631_v61 }
  0x1f   :  { %591 = vmatpush3.bf16.msra.mxu0 %v631_v61  ;;  %623 = vmatpush3.bf16.msra.mxu1 %v631_v61 }
  0x22   :  { %593 = vmatmul.mubr.bf16.vlgmr.msra.gmra.mrb[0].mxu0 %v115_v16  ;;  %601 = vmatmul.mubr.bf16.vlgmr.msra.gmra.mrb[0].mxu1 %v119_v17 }
  0x23   :  { %596 = vmatprep.mubr.bf16.mxu0 %v116_v5  ;;  %604 = vmatprep.mubr.bf16.mxu1 %v120_v20 }
  0x2a   :  { %597 = vmatmul.mubr.bf16.gmra.mrb[4].mxu0 %v117_v25  ;;  %605 = vmatmul.mubr.bf16.gmra.mrb[4].mxu1 %v121_v26 }
  0xf5   :  { %v594_v27 = vpop.f32.mrb[0].mxu0  ;;  %v602_v28 = vpop.f32.mrb[0].mxu1 }
  0xf6   :  { %v220_v29 = vpop.f32.mrb[1].mxu0  ;;  %v252_v10 = vpop.f32.mrb[1].mxu1  ;;  %v386_v41 = vmul.f32 %v594_v27, %v594_v27  ;;  %v394_v15 = vmul.f32 %v602_v28, %v602_v28 }
  0xf7   :  { %v595_v30 = vpop.f32.mrb[2].mxu0  ;;  %v603_v31 = vpop.f32.mrb[2].mxu1  ;;  %v384_v32 = vmul.f32 %v220_v29, %v220_v29  ;;  %v392_v8 = vmul.f32 %v252_v10, %v252_v10 }
  0xf8   :  { %v514_v33 = vpack.c.bf16 %v595_v30, %v594_v27  ;;  %v223_v34 = vpop.f32.mrb[3].mxu0  ;;  %v534_v35 = vpack.c.bf16 %v603_v31, %v602_v28  ;;  %v255_v36 = vpop.f32.mrb[3].mxu1  ;;  %v387_v44 = vmul.f32 %v595_v30, %v595_v30  ;;  %v395_v18 = vmul.f32 %v603_v31, %v603_v31 }
  0xf9   :  { %v509_v37 = vpack.c.bf16 %v223_v34, %v220_v29  ;;  %v363_v38 = vadd.f32 %v223_v34, %v220_v29  ;;  %v385_v39 = vmul.f32 %v223_v34, %v223_v34  ;;  %v529_v40 = vpack.c.bf16 %v255_v36, %v252_v10 }
  0xfa   :  { %553 = vst [vmem:[%s783_s4 + $0x8] sm:$0xff] %v514_v33   ;;  %557 = vst [vmem:[%s783_s4 + $0x28] sm:$0xff] %v534_v35   ;;  %v393_v14 = vmul.f32 %v255_v36, %v255_v36 }
  0xfb   :  { %510 = vst [vmem:[%s783_s4] sm:$0xff] %v509_v37   ;;  %v364_v42 = vadd.f32 %v594_v27, %v363_v38  ;;  %v400_v43 = vadd.f32 %v385_v39, %v384_v32  ;;  %556 = vst [vmem:[%s783_s4 + $0x20] sm:$0xff] %v529_v40  }
  0xfd   :  { %v401_v45 = vadd.f32 %v400_v43, %v386_v41  ;;  %v598_v46 = vpop.f32.mrb[4].mxu0  ;;  %v365_v47 = vadd.f32 %v595_v30, %v364_v42  ;;  %v606_v48 = vpop.f32.mrb[4].mxu1 }
  0xfe   :  { %v236_v49 = vpop.f32.mrb[5].mxu0  ;;  %v268_v50 = vpop.f32.mrb[5].mxu1  ;;  %v390_v1 = vmul.f32 %v598_v46, %v598_v46  ;;  %v398_v26 = vmul.f32 %v606_v48, %v606_v48 }
  0xff   :  { %v366_v51 = vadd.f32 %v365_v47, %v236_v49  ;;  %v388_v52 = vmul.f32 %v236_v49, %v236_v49  ;;  %v402_v53 = vadd.f32 %v401_v45, %v387_v44  ;;  %v599_v54 = vpop.f32.mrb[6].mxu0  ;;  %v607_v55 = vpop.f32.mrb[6].mxu1  ;;  %v396_v20 = vmul.f32 %v268_v50, %v268_v50 }
 0x100   :  { %v524_v56 = vpack.c.bf16 %v599_v54, %v598_v46  ;;  %v239_v57 = vpop.f32.mrb[7].mxu0  ;;  %v544_v58 = vpack.c.bf16 %v607_v55, %v606_v48  ;;  %v271_v59 = vpop.f32.mrb[7].mxu1  ;;  %v391_v4 = vmul.f32 %v599_v54, %v599_v54 }
 0x101   :  { %v403_v60 = vadd.f32 %v402_v53, %v388_v52  ;;  %v519_v61 = vpack.c.bf16 %v239_v57, %v236_v49  ;;  %v367_v62 = vadd.f32 %v366_v51, %v239_v57  ;;  %v389_v63 = vmul.f32 %v239_v57, %v239_v57 }
 0x102   :  { %555 = vst [vmem:[%s783_s4 + $0x18] sm:$0xff] %v524_v56   ;;  %559 = vst [vmem:[%s783_s4 + $0x38] sm:$0xff] %v544_v58   ;;  %v539_v0 = vpack.c.bf16 %v271_v59, %v268_v50  ;;  %v397_v25 = vmul.f32 %v271_v59, %v271_v59 }
 0x103   :  { %554 = vst [vmem:[%s783_s4 + $0x10] sm:$0xff] %v519_v61   ;;  %v368_v2 = vadd.f32 %v598_v46, %v367_v62  ;;  %v404_v3 = vadd.f32 %v403_v60, %v389_v63 }
 0x104   :  { %558 = vst [vmem:[%s783_s4 + $0x30] sm:$0xff] %v539_v0  }
 0x105   :  { %v405_v6 = vadd.f32 %v404_v3, %v390_v1  ;;  %v369_v7 = vadd.f32 %v599_v54, %v368_v2 }
 0x107   :  { %v370_v9 = vadd.f32 %v369_v7, %v252_v10  ;;  %v406_v11 = vadd.f32 %v405_v6, %v391_v4  ;;  %v399_v10 = vmul.f32 %v607_v55, %v607_v55 }
 0x109   :  { %v407_v12 = vadd.f32 %v406_v11, %v392_v8  ;;  %v371_v13 = vadd.f32 %v370_v9, %v255_v36 }
 0x10b   :  { %v372_v16 = vadd.f32 %v602_v28, %v371_v13  ;;  %v408_v17 = vadd.f32 %v407_v12, %v393_v14 }
 0x10d   :  { %v409_v19 = vadd.f32 %v408_v17, %v394_v15  ;;  %v373_v5 = vadd.f32 %v603_v31, %v372_v16 }
 0x10f   :  { %v374_v21 = vadd.f32 %v373_v5, %v268_v50  ;;  %v410_v22 = vadd.f32 %v409_v19, %v395_v18 }
 0x111   :  { %v411_v23 = vadd.f32 %v410_v22, %v396_v20  ;;  %v375_v24 = vadd.f32 %v374_v21, %v271_v59 }
 0x113   :  { %v376_v27 = vadd.f32 %v606_v48, %v375_v24  ;;  %v412_v29 = vadd.f32 %v411_v23, %v397_v25 }
 0x115   :  { %v377_v30 = vadd.f32 %v607_v55, %v376_v27  ;;  %v413_v32 = vadd.f32 %v412_v29, %v398_v26 }
 0x117   :  { %v378_v33 = vrot.slane %v377_v30, 4  ;;  %v414_v34 = vadd.f32 %v413_v32, %v399_v10 }
 0x119   :  { %v379_v35 = vadd.f32 %v378_v33, %v377_v30  ;;  %v415_v28 = vrot.slane %v414_v34, 4 }
 0x11b   :  { %v380_v36 = vrot.slane %v379_v35, 2  ;;  %v416_v37 = vadd.f32 %v415_v28, %v414_v34 }
 0x11d   :  { %v381_v38 = vadd.f32 %v380_v36, %v379_v35  ;;  %v417_v31 = vrot.slane %v416_v37, 2 }
 0x11f   :  { %v382_v39 = vrot.slane %v381_v38, 1  ;;  %v418_v40 = vadd.f32 %v417_v31, %v416_v37 }
 0x121   :  { %v419_v41 = vrot.slane %v418_v40, 1  ;;  %v383_v42 = vadd.f32 %v382_v39, %v381_v38 }
 0x123   :  { %v420_v43 = vadd.f32 %v419_v41, %v418_v40 }
 0x125   :  { %v422_v44 = vsel %vm421_vm0, %v383_v42, %v420_v43 }
 0x126   :  { %423 = vst [vmem:[%s784_s5] sm:$0x3] %v422_v44 }

// kernel: bottleneck_forward.7
= control target key start
LH: loop header
LB: loop body
LE: loop exit
PB: predicated region body
PF: predicated region fallthrough
CT: control target
= control target key end

     0   :  { %s429_s0 = inlined_call_operand.vmem [shape: bf16[128,128], index: 0, kind: input, shape index: {}]   ;;  %s430_s1 = inlined_call_operand.vmem [shape: bf16[128,128], index: 1, kind: input, shape index: {}]   ;;  %s431_s2 = inlined_call_operand.vmem [shape: f32[1,128], index: 2, kind: input, shape index: {}]   ;;  %s432_s3 = inlined_call_operand.vmem [shape: f32[1,128], index: 3, kind: input, shape index: {}]   ;;  %s433_s4 = inlined_call_operand.hbm [shape: f32[128,128], index: 4, kind: output, shape index: {}]  }
   0x1   :  { %v195_v0 = vld [vmem:[%s429_s0] sm:$0xff]   ;;  %v258_v5 = vld [vmem:[%s429_s0 + $0x8] sm:$0xff]   ;;  %v259_v12 = vld [vmem:[%s429_s0 + $0x10] sm:$0xff]  }
   0x2   :  { %v333_v1 = vld [vmem:[%s431_s2] ss:$0 sm:$0xff]  ;;  %v196_v2 = vunpack.c.l.bf16 %v195_v0  ;;  %v197_v4 = vunpack.c.h.bf16 %v195_v0  ;;  %v265_v6 = vld [vmem:[%s430_s1 + $0x8] sm:$0xff]   ;;  %v200_v10 = vunpack.c.l.bf16 %v258_v5  ;;  %v266_v13 = vld [vmem:[%s430_s1 + $0x10] sm:$0xff]   ;;  %v201_v16 = vunpack.c.h.bf16 %v258_v5 }
   0x3   :  { %v227_v3 = vld [vmem:[%s430_s1] sm:$0xff]   ;;  %v232_v11 = vunpack.c.l.bf16 %v265_v6  ;;  %v233_v17 = vunpack.c.h.bf16 %v265_v6  ;;  %v260_v18 = vld [vmem:[%s429_s0 + $0x18] sm:$0xff]   ;;  %v204_v20 = vunpack.c.l.bf16 %v259_v12  ;;  %v236_v21 = vunpack.c.l.bf16 %v266_v13 }
   0x4   :  { %v347_v7 = vld [vmem:[%s432_s3] ss:$0 sm:$0xff]  ;;  %v228_v8 = vunpack.c.l.bf16 %v227_v3  ;;  %v229_v9 = vunpack.c.h.bf16 %v227_v3  ;;  %v57_v14 = vmul.f32 %v196_v2, %v333_v1  ;;  %v58_v15 = vmul.f32 %v197_v4, %v333_v1  ;;  %v267_v23 = vld [vmem:[%s430_s1 + $0x18] sm:$0xff]  }
   0x5   :  { %v59_v19 = vmul.f32 %v200_v10, %v333_v1  ;;  %v205_v22 = vunpack.c.h.bf16 %v259_v12  ;;  %v60_v26 = vmul.f32 %v201_v16, %v333_v1  ;;  %v237_v27 = vunpack.c.h.bf16 %v266_v13 }
   0x6   :  { %v80_v24 = vadd.f32 %v347_v7, %v57_v14  ;;  %v81_v25 = vadd.f32 %v347_v7, %v58_v15  ;;  %v61_v29 = vmul.f32 %v204_v20, %v333_v1  ;;  %v208_v31 = vunpack.c.l.bf16 %v260_v18 }
   0x7   :  { %v82_v28 = vadd.f32 %v347_v7, %v59_v19  ;;  %v62_v30 = vmul.f32 %v205_v22, %v333_v1 }
   0x8   :  { %9 = vsyncpa [#allocation3], 0  ;;  %v128_v32 = vadd.f32 %v228_v8, %v80_v24  ;;  %v129_v33 = vadd.f32 %v229_v9, %v81_v25  ;;  %v83_v34 = vadd.f32 %v347_v7, %v60_v26  ;;  %v240_v35 = vunpack.c.l.bf16 %v267_v23  ;;  %v261_v40 = vld [vmem:[%s429_s0 + $0x20] sm:$0xff]   ;;  %v262_v54 = vld [vmem:[%s429_s0 + $0x28] sm:$0xff]  }
   0x9   :  { %v130_v36 = vadd.f32 %v232_v11, %v82_v28  ;;  %v84_v37 = vadd.f32 %v347_v7, %v61_v29  ;;  %v85_v38 = vadd.f32 %v347_v7, %v62_v30  ;;  %v63_v39 = vmul.f32 %v208_v31, %v333_v1  ;;  %v268_v45 = vld [vmem:[%s430_s1 + $0x20] sm:$0xff]   ;;  %v269_v55 = vld [vmem:[%s430_s1 + $0x28] sm:$0xff]   ;;  %v263_v0 = vld [vmem:[%s429_s0 + $0x30] sm:$0xff]  }
   0xa   :  { %v144_v41 = vmax.f32 %v128_v32, 0.0  ;;  %v145_v42 = vmax.f32 %v129_v33, 0.0  ;;  %v131_v43 = vadd.f32 %v233_v17, %v83_v34  ;;  %v209_v44 = vunpack.c.h.bf16 %v260_v18  ;;  %v270_v2 = vld [vmem:[%s430_s1 + $0x30] sm:$0xff]   ;;  %v264_v16 = vld [vmem:[%s429_s0 + $0x38] sm:$0xff]   ;;  %s299_s0 = smov [#allocation2]  }
   0xb   :  { %v146_v46 = vmax.f32 %v130_v36, 0.0  ;;  %v132_v47 = vadd.f32 %v236_v21, %v84_v37  ;;  %v133_v48 = vadd.f32 %v237_v27, %v85_v38  ;;  %v86_v49 = vadd.f32 %v347_v7, %v63_v39  ;;  %v271_v21 = vld [vmem:[%s430_s1 + $0x38] sm:$0xff]   ;;  %s181_s1 = sshll.u32 %s299_s0, 4  ;;  %s182_s1 = int_to_ptr.vmem [resolvable:$true] %s181_s1 }
   0xc   :  { %160 = vst [vmem:[#allocation2] sm:$0xff] %v144_v41  ;;  %161 = vst [vmem:[#allocation2 + $0x8] sm:$0xff] %v145_v42  ;;  %v147_v50 = vmax.f32 %v131_v43, 0.0  ;;  %v64_v51 = vmul.f32 %v209_v44, %v333_v1  ;;  %v241_v52 = vunpack.c.h.bf16 %v267_v23  ;;  %v212_v53 = vunpack.c.l.bf16 %v261_v40  ;;  %s275_s23 = scalar_lea.vmem %s182_s1, 2048  ;;  %p280_p1 = scmp.lt.s32.totalorder %s182_s1, %s182_s1 }
   0xd   :  { %162 = vst [vmem:[#allocation2 + $0x10] sm:$0xff] %v146_v46  ;;  %v148_v56 = vmax.f32 %v132_v47, 0.0  ;;  %v149_v57 = vmax.f32 %v133_v48, 0.0  ;;  %v134_v58 = vadd.f32 %v240_v35, %v86_v49  ;;  %v244_v59 = vunpack.c.l.bf16 %v268_v45  ;;  %p276_p0 = scmp.ne.s32.totalorder %s182_s1, %s275_s23  ;;  %p281_p2 = scmp.lt.s32.totalorder %s275_s23, %s275_s23 }
   0xe   :  { %163 = vst [vmem:[#allocation2 + $0x18] sm:$0xff] %v147_v50  ;;  %v87_v60 = vadd.f32 %v347_v7, %v64_v51  ;;  %v65_v61 = vmul.f32 %v212_v53, %v333_v1  ;;  %v213_v62 = vunpack.c.h.bf16 %v261_v40  ;;  %v245_v63 = vunpack.c.h.bf16 %v268_v45 }
   0xf   :  { %164 = vst [vmem:[#allocation2 + $0x20] sm:$0xff] %v148_v56  ;;  %165 = vst [vmem:[#allocation2 + $0x28] sm:$0xff] %v149_v57  ;;  %v150_v3 = vmax.f32 %v134_v58, 0.0  ;;  %v216_v4 = vunpack.c.l.bf16 %v262_v54  ;;  %v248_v5 = vunpack.c.l.bf16 %v269_v55  ;;  %v217_v6 = vunpack.c.h.bf16 %v262_v54  ;;  %p282_p3 = por %p281_p2, %p280_p1 }
  0x10   :  { %v135_v8 = vadd.f32 %v241_v52, %v87_v60  ;;  %v88_v9 = vadd.f32 %v347_v7, %v65_v61  ;;  %v66_v10 = vmul.f32 %v213_v62, %v333_v1  ;;  %v249_v11 = vunpack.c.h.bf16 %v269_v55 }
  0x11   :  { %166 = vst [vmem:[#allocation2 + $0x30] sm:$0xff] %v150_v3  ;;  %v67_v12 = vmul.f32 %v216_v4, %v333_v1  ;;  %v68_v13 = vmul.f32 %v217_v6, %v333_v1  ;;  %v220_v14 = vunpack.c.l.bf16 %v263_v0  ;;  %v252_v15 = vunpack.c.l.bf16 %v270_v2  ;;  %p283_p4 = pnand %p282_p3, %p276_p0 }
  0x12   :  { %v151_v17 = vmax.f32 %v135_v8, 0.0  ;;  %v136_v18 = vadd.f32 %v244_v59, %v88_v9  ;;  %v89_v19 = vadd.f32 %v347_v7, %v66_v10  ;;  %v221_v20 = vunpack.c.h.bf16 %v263_v0 }
  0x13   :  { %v90_v22 = vadd.f32 %v347_v7, %v67_v12  ;;  %v91_v23 = vadd.f32 %v347_v7, %v68_v13  ;;  %v69_v24 = vmul.f32 %v220_v14, %v333_v1  ;;  %v253_v25 = vunpack.c.h.bf16 %v270_v2 }
  0x14   :  { %167 = vst [vmem:[#allocation2 + $0x38] sm:$0xff] %v151_v17  ;;  %v152_v26 = vmax.f32 %v136_v18, 0.0  ;;  %v137_v27 = vadd.f32 %v245_v63, %v89_v19  ;;  %v70_v28 = vmul.f32 %v221_v20, %v333_v1  ;;  %v224_v29 = vunpack.c.l.bf16 %v264_v16 }
  0x15   :  { %v138_v30 = vadd.f32 %v248_v5, %v90_v22  ;;  %v139_v31 = vadd.f32 %v249_v11, %v91_v23  ;;  %v92_v32 = vadd.f32 %v347_v7, %v69_v24  ;;  %v256_v33 = vunpack.c.l.bf16 %v271_v21 }
  0x16   :  { %168 = vst [vmem:[#allocation2 + $0x40] sm:$0xff] %v152_v26  ;;  %v153_v34 = vmax.f32 %v137_v27, 0.0  ;;  %v93_v35 = vadd.f32 %v347_v7, %v70_v28  ;;  %v71_v36 = vmul.f32 %v224_v29, %v333_v1  ;;  %v225_v37 = vunpack.c.h.bf16 %v264_v16 }
  0x17   :  { %v154_v38 = vmax.f32 %v138_v30, 0.0  ;;  %v155_v39 = vmax.f32 %v139_v31, 0.0  ;;  %v140_v40 = vadd.f32 %v252_v15, %v92_v32  ;;  %v257_v44 = vunpack.c.h.bf16 %v271_v21 }
  0x18   :  { %169 = vst [vmem:[#allocation2 + $0x48] sm:$0xff] %v153_v34  ;;  %v141_v41 = vadd.f32 %v253_v25, %v93_v35  ;;  %v94_v42 = vadd.f32 %v347_v7, %v71_v36  ;;  %v72_v43 = vmul.f32 %v225_v37, %v333_v1 }
  0x19   :  { %170 = vst [vmem:[#allocation2 + $0x50] sm:$0xff] %v154_v38  ;;  %171 = vst [vmem:[#allocation2 + $0x58] sm:$0xff] %v155_v39  ;;  %v156_v45 = vmax.f32 %v140_v40, 0.0 }
  0x1a   :  { %v157_v46 = vmax.f32 %v141_v41, 0.0  ;;  %v142_v47 = vadd.f32 %v256_v33, %v94_v42  ;;  %v95_v48 = vadd.f32 %v347_v7, %v72_v43 }
  0x1b   :  { %172 = vst [vmem:[#allocation2 + $0x60] sm:$0xff] %v156_v45 }
  0x1c   :  { %173 = vst [vmem:[#allocation2 + $0x68] sm:$0xff] %v157_v46  ;;  %v158_v49 = vmax.f32 %v142_v47, 0.0  ;;  %v143_v50 = vadd.f32 %v257_v44, %v95_v48 }
  0x1e   :  { %174 = vst [vmem:[#allocation2 + $0x70] sm:$0xff] %v158_v49  ;;  %v159_v51 = vmax.f32 %v143_v50, 0.0 }
  0x20   :  { %175 = vst [vmem:[#allocation2 + $0x78] sm:$0xff] %v159_v51 }
  0x21   :  { %286 = shalt.err (!%p283_p4)
}
  0x22   :  { %s287_s26 = scalar_lea.hbm %s433_s4, 2048 }
  0x23   :  { %p288_p5 = scmp.ne.s32.totalorder %s433_s4, %s287_s26  ;;  %p291_p6 = scmp.lt.u32.totalorder %s287_s26, %s433_s4 }
  0x25   :  { %p293_p7 = pnand %p291_p6, %p288_p5 }
  0x27   :  { %296 = shalt.err (!%p293_p7)
}
  0x28   :  { %s300_s3 = smov 128   ;;  %s301_s30 = smov 8  }
  0x29   :  { %187 = dma.vmem_to_hbm [thread:$0]  %s182_s1, 2048, %s433_s4, [#allocation3], %s300_s3, %s300_s3, %s301_s30  }
  0x2a   :  { %297 = dma.done.wait [#allocation3], 2048  }
  0x2b   :  { %298 = vsyncadd [#allocation3], 4294965248 }
  0x2c   :  { %191 = vsyncpa [#allocation3], 1 }

// kernel: bottleneck_forward.5
= control target key start
LH: loop header
LB: loop body
LE: loop exit
PB: predicated region body
PF: predicated region fallthrough
CT: control target
= control target key end

     0   :  { %s3028_s18 = smov 0   ;;  %s3605_s0 = inlined_call_operand.vmem [shape: bf16[2,64,128], index: 0, kind: input, shape index: {}]   ;;  %s3606_s1 = inlined_call_operand.vmem [shape: bf16[9,128,128], index: 1, kind: input, shape index: {}]   ;;  %s3607_s2 = inlined_call_operand.vmem [shape: f32[1,128], index: 2, kind: input, shape index: {}]   ;;  %s3608_s3 = inlined_call_operand.vmem [shape: f32[1,128], index: 3, kind: input, shape index: {}]   ;;  %s3609_s4 = inlined_call_operand.vmem [shape: bf16[2,64,128], index: 4, kind: output, shape index: {0}]   ;;  %s3610_s5 = inlined_call_operand.vmem [shape: f32[2,2,128], index: 5, kind: output, shape index: {1}]  }
   0x1 LB: > { %s2156_s19 = sadd.s32 4294967295, %s2994_s18   ;;  %p2160_p0 = scmp.ge.s32.totalorder %s2994_s18, 1  ;;  %s2994_s18 = sphi %s3028_s18, %s16_s18  }
   0x2   : > { %p190_p1 = scmp.lt.s32.totalorder %s2994_s18, 3 }
   0x4   : > { %p191_p2 = pnand %p2160_p0, %p190_p1 }
   0x5   : > { %v2916_v0 = vld [vmem:[%s3606_s1 + $0x40] sm:$0xff] (!%p191_p2)   ;;  %v2918_v2 = vld [vmem:[%s3606_s1 + $0x48] sm:$0xff] (!%p191_p2)   ;;  %p222_p3 = scmp.lt.s32.totalorder (!%p191_p2), %s2156_s19, 1  ;;  %v2920_v4 = vld [vmem:[%s3606_s1 + $0x50] sm:$0xff] (!%p191_p2)   ;;  %v299_v26 = vlaneseq (!%p191_p2)  ;;  %v2996_v35 = vmov (!%p191_p2), 0.0   ;;  %vm2997_vm3 = vmmov (!%p191_p2), 1  }
   0x6   : > { %194 = sbr.rel (%p191_p2) target bundleno = 414 (0x19e), region = 36  ;;  %v2917_v1 = vld [vmem:[%s3606_s1 + $0x100] sm:$0xff] (!%p191_p2)   ;;  %2610 = vmatprep.subr.bf16.mxu1 (!%p191_p2), %v2916_v0  ;;  %v2919_v3 = vld [vmem:[%s3606_s1 + $0x108] sm:$0xff] (!%p191_p2)   ;;  %v2921_v5 = vld [vmem:[%s3606_s1 + $0x110] sm:$0xff] (!%p191_p2)  }
   0x7   : > { %2706 = vmatprep.subr.bf16.mxu0 (!%p191_p2), %v2917_v1  ;;  %2611 = vmatpush3.bf16.msra.mxu1 (!%p191_p2), %v2916_v0  ;;  %v2922_v6 = vld [vmem:[%s3606_s1 + $0x58] sm:$0xff] (!%p191_p2)   ;;  %v2924_v8 = vld [vmem:[%s3606_s1 + $0x60] sm:$0xff] (!%p191_p2)   ;;  %v2926_v10 = vld [vmem:[%s3606_s1 + $0x68] sm:$0xff] (!%p191_p2)   ;;  %v3115_v38 = vshrl.u32 (!%p191_p2), %v299_v26, 7 }
   0x8   : > { %2707 = vmatpush3.bf16.msra.mxu0 (!%p191_p2), %v2917_v1  ;;  %2612 = vmatprep.subr.bf16.mxu1 (!%p191_p2), %v2918_v2  ;;  %v2923_v7 = vld [vmem:[%s3606_s1 + $0x118] sm:$0xff] (!%p191_p2)   ;;  %v2925_v9 = vld [vmem:[%s3606_s1 + $0x120] sm:$0xff] (!%p191_p2)   ;;  %v2927_v13 = vld [vmem:[%s3606_s1 + $0x128] sm:$0xff] (!%p191_p2)  }
   0x9   : > { %2708 = vmatprep.subr.bf16.mxu0 (!%p191_p2), %v2919_v3  ;;  %v3083_v12 = vld [vmem:[%s3607_s2] ss:$0 sm:$0xff] (!%p191_p2)  ;;  %v2928_v20 = vld [vmem:[%s3606_s1 + $0x70] sm:$0xff] (!%p191_p2)   ;;  %v2930_v29 = vld [vmem:[%s3606_s1 + $0x78] sm:$0xff] (!%p191_p2)   ;;  %v301_v44 = vadd.s32 (!%p191_p2), 8, %v3115_v38  ;;  %v312_v61 = vand.u32 (!%p191_p2), 7, %v3115_v38 }
   0xa   : > { %v3091_v16 = vld [vmem:[%s3608_s3] ss:$0 sm:$0xff] (!%p191_p2)  ;;  %v2929_v23 = vld [vmem:[%s3606_s1 + $0x130] sm:$0xff] (!%p191_p2)   ;;  %v2931_v34 = vld [vmem:[%s3606_s1 + $0x138] sm:$0xff] (!%p191_p2)  }
   0xb   : > { %2613 = vmatpush3.bf16.msra.mxu1 (!%p191_p2), %v2918_v2  ;;  %v2932_v41 = vld [vmem:[%s3606_s1] sm:$0xff] (!%p191_p2)   ;;  %v2934_v50 = vld [vmem:[%s3606_s1 + $0x8] sm:$0xff] (!%p191_p2)   ;;  %v319_v56 = vand.u32 (!%p191_p2), 7, %v301_v44  ;;  %v2936_v62 = vld [vmem:[%s3606_s1 + $0x10] sm:$0xff] (!%p191_p2)   ;;  %vm3162_vm1 = vcmp.le.s32.totalorder (!%p191_p2), %v312_v61, 6 }
   0xc   : > { %2709 = vmatpush3.bf16.msra.mxu0 (!%p191_p2), %v2919_v3  ;;  %2614 = vmatprep.subr.bf16.mxu1 (!%p191_p2), %v2920_v4  ;;  %v2933_v42 = vld [vmem:[%s3606_s1 + $0x140] sm:$0xff] (!%p191_p2)   ;;  %v2935_v55 = vld [vmem:[%s3606_s1 + $0x148] sm:$0xff] (!%p191_p2)   ;;  %v2937_v3 = vld [vmem:[%s3606_s1 + $0x150] sm:$0xff] (!%p191_p2)  }
   0xd   : > { %s3655_s19 = smov (!%p222_p3, %s2156_s19), 1  ;;  %2710 = vmatprep.subr.bf16.mxu0 %v2921_v5  ;;  %vm3150_vm0 = vcmp.ge.s32.totalorder %v319_v56, 1  ;;  %vm3173_vm2 = vcmp.le.s32.totalorder %v319_v56, 6  ;;  %v2942_v26 = vld [vmem:[%s3606_s1 + $0x28] sm:$0xff]   ;;  %v2947_v44 = vld [vmem:[%s3606_s1 + $0x178] sm:$0xff]  }
   0xe   : > { %s2450_s11 = sshll.u32 %s3655_s19, 5  ;;  %vm2200_vm4 = vmpackc.low %vm3150_vm0, %vm2997_vm3 }
   0xf   : > { %2615 = vmatpush3.bf16.msra.mxu1 %v2920_v4  ;;  %s3074_s20 = scalar_lea.vmem %s3605_s0, %s2450_s11  ;;  %vm3611_vm5 = vmpackc.low %vm3173_vm2, %vm3162_vm1  ;;  %v2976_v4 = vld [vmem:[%s3606_s1 + $0xf0] sm:$0xff]   ;;  %s231_s17 = scalar_lea.vmem %s3609_s4, %s2450_s11 }
  0x10   : > { %2711 = vmatpush3.bf16.msra.mxu0 %v2921_v5  ;;  %2616 = vmatprep.subr.bf16.mxu1 %v2922_v6  ;;  %v2461_v11 = vld [vmem:[%s3074_s20] sm:$0xff]   ;;  %v2496_v19 = vld [vmem:[%s3074_s20 + $0x8] sm:$0xff]   ;;  %v2497_v43 = vld [vmem:[%s3074_s20 + $0x10] sm:$0xff]   ;;  %s2165_s11 = sshll.u32 %s3655_s19, 1 }
  0x11   : > { %2712 = vmatprep.subr.bf16.mxu0 %v2923_v7  ;;  %v2462_v14 = vunpack.c.l.bf16 %v2461_v11  ;;  %v2463_v15 = vunpack.c.h.bf16 %v2461_v11  ;;  %v2466_v21 = vunpack.c.l.bf16 %v2496_v19  ;;  %v2467_v22 = vunpack.c.h.bf16 %v2496_v19  ;;  %v2498_v49 = vld [vmem:[%s3074_s20 + $0x18] sm:$0xff]   ;;  %s235_s23 = scalar_lea.vmem %s3610_s5, %s2165_s11 }
  0x12   : > { %v2470_v46 = vunpack.c.l.bf16 %v2497_v43  ;;  %v2471_v47 = vunpack.c.h.bf16 %v2497_v43  ;;  %v2474_v53 = vunpack.c.l.bf16 %v2498_v49  ;;  %v2475_v54 = vunpack.c.h.bf16 %v2498_v49 }
  0x13   : > { %2617 = vmatpush3.bf16.msra.mxu1 %v2922_v6  ;;  %v260_v17 = vmul.f32 %v2462_v14, %v3083_v12  ;;  %v261_v18 = vmul.f32 %v2463_v15, %v3083_v12  ;;  %v262_v27 = vmul.f32 %v2466_v21, %v3083_v12  ;;  %v263_v28 = vmul.f32 %v2467_v22, %v3083_v12  ;;  %v2940_v21 = vld [vmem:[%s3606_s1 + $0x20] sm:$0xff]  }
  0x14   : > { %2713 = vmatpush3.bf16.msra.mxu0 %v2923_v7  ;;  %2618 = vmatprep.subr.bf16.mxu1 %v2924_v8  ;;  %v264_v51 = vmul.f32 %v2470_v46, %v3083_v12  ;;  %v265_v52 = vmul.f32 %v2471_v47, %v3083_v12  ;;  %v266_v59 = vmul.f32 %v2474_v53, %v3083_v12  ;;  %v3615_v11 = vmov 0  ;;  %v2941_v22 = vld [vmem:[%s3606_s1 + $0x160] sm:$0xff]  }
  0x15   : > { %2714 = vmatprep.subr.bf16.mxu0 %v2925_v9  ;;  %v275_v24 = vadd.f32 %v3091_v16, %v260_v17  ;;  %v276_v25 = vadd.f32 %v3091_v16, %v261_v18  ;;  %v277_v32 = vadd.f32 %v3091_v16, %v262_v27  ;;  %v278_v33 = vadd.f32 %v3091_v16, %v263_v28  ;;  %v2939_v17 = vld [vmem:[%s3606_s1 + $0x158] sm:$0xff]   ;;  %v2943_v27 = vld [vmem:[%s3606_s1 + $0x168] sm:$0xff]   ;;  %v2949_v53 = vld [vmem:[%s3606_s1 + $0x180] sm:$0xff]  }
  0x16   : > { %v279_v57 = vadd.f32 %v3091_v16, %v264_v51  ;;  %v280_v58 = vadd.f32 %v3091_v16, %v265_v52  ;;  %v267_v60 = vmul.f32 %v2475_v54, %v3083_v12  ;;  %v281_v1 = vadd.f32 %v3091_v16, %v266_v59  ;;  %v2948_v51 = vld [vmem:[%s3606_s1 + $0x80] sm:$0xff]  }
  0x17   : > { %2619 = vmatpush3.bf16.msra.mxu1 %v2924_v8  ;;  %v283_v30 = vmax.f32 %v275_v24, 0.0  ;;  %v284_v31 = vmax.f32 %v276_v25, 0.0  ;;  %v285_v39 = vmax.f32 %v277_v32, 0.0  ;;  %v286_v40 = vmax.f32 %v278_v33, 0.0  ;;  %v2944_v33 = vld [vmem:[%s3606_s1 + $0x30] sm:$0xff]  }
  0x18   : > { %2715 = vmatpush3.bf16.msra.mxu0 %v2925_v9  ;;  %2620 = vmatprep.subr.bf16.mxu1 %v2926_v10  ;;  %v287_v63 = vmax.f32 %v279_v57, 0.0  ;;  %v288_v0 = vmax.f32 %v280_v58, 0.0  ;;  %v282_v2 = vadd.f32 %v3091_v16, %v267_v60  ;;  %v289_v7 = vmax.f32 %v281_v1, 0.0  ;;  %v2987_v16 = vld [vmem:[%s3606_s1 + $0x238] sm:$0xff]  }
  0x19   : > { %2716 = vmatprep.subr.bf16.mxu0 %v2927_v13  ;;  %291 = vst [vmem:[#allocation2 + $0x10] sm:$0xff] %v283_v30  ;;  %v528_v36 = vpack.c.bf16 %v283_v30, %v2996_v35  ;;  %292 = vst [vmem:[#allocation2 + $0x18] sm:$0xff] %v284_v31  ;;  %v1139_v37 = vpack.c.bf16 %v284_v31, %v283_v30  ;;  %v3125_v45 = vpack.c.bf16 %v285_v39, %v284_v31  ;;  %v3625_v46 = vmov 0 }
  0x1a   : > { %293 = vst [vmem:[#allocation2 + $0x20] sm:$0xff] %v285_v39  ;;  %294 = vst [vmem:[#allocation2 + $0x28] sm:$0xff] %v286_v40  ;;  %v1140_v48 = vpack.c.bf16 %v286_v40, %v285_v39  ;;  %v3154_v5 = vpack.c.bf16 %v287_v63, %v286_v40  ;;  %v1141_v6 = vpack.c.bf16 %v288_v0, %v287_v63  ;;  %v290_v8 = vmax.f32 %v282_v2, 0.0  ;;  %v2946_v40 = vld [vmem:[%s3606_s1 + $0x38] sm:$0xff]  }
  0x1b   : > { %2621 = vmatpush3.bf16.msra.mxu1 %v2926_v10  ;;  %2626 = vmatprep.mubr.bf16.mxu1 %v528_v36  ;;  %295 = vst [vmem:[#allocation2 + $0x30] sm:$0xff] %v287_v63  ;;  %296 = vst [vmem:[#allocation2 + $0x38] sm:$0xff] %v288_v0  ;;  %v3616_v11 = vsel %vm3162_vm1, 4294967295, %v3615_v11  ;;  %v3171_v14 = vpack.c.bf16 %v289_v7, %v288_v0  ;;  %v303_v24 = vadd.s32 24, %v3115_v38  ;;  %v3210_v25 = vadd.s32 48, %v3115_v38  ;;  %v2950_v0 = vld [vmem:[%s3606_s1 + $0x88] sm:$0xff]  }
  0x1c   : > { %2717 = vmatpush3.bf16.msra.mxu0 %v2927_v13  ;;  %2622 = vmatprep.subr.bf16.mxu1 %v2928_v20  ;;  %v2938_v13 = vld [vmem:[%s3606_s1 + $0x18] sm:$0xff]   ;;  %297 = vst [vmem:[#allocation2 + $0x40] sm:$0xff] %v289_v7  ;;  %298 = vst [vmem:[#allocation2 + $0x48] sm:$0xff] %v290_v8  ;;  %v1142_v15 = vpack.c.bf16 %v290_v8, %v289_v7  ;;  %v3184_v19 = vpack.c.bf16 %v2996_v35, %v290_v8  ;;  %v304_v30 = vadd.s32 32, %v3115_v38  ;;  %v2961_v36 = vld [vmem:[%s3606_s1 + $0x1b0] sm:$0xff]  }
  0x1d   : > { %2718 = vmatprep.subr.bf16.mxu0 %v2929_v23  ;;  %2722 = vmatprep.mubr.bf16.mxu0 %v1139_v37  ;;  %v305_v31 = vadd.s32 40, %v3115_v38  ;;  %v354_v32 = vand.u32 7, %v3210_v25  ;;  %v307_v59 = vadd.s32 56, %v3115_v38  ;;  %v2953_v25 = vld [vmem:[%s3606_s1 + $0x190] sm:$0xff]   ;;  %v2962_v37 = vld [vmem:[%s3606_s1 + $0xb8] sm:$0xff]  }
  0x1e   : > { %v340_v39 = vand.u32 7, %v304_v30 }
  0x1f   : > { %2623 = vmatpush3.bf16.msra.mxu1 %v2928_v20  ;;  %vm3238_vm8 = vcmp.le.s32.totalorder %v354_v32, 6  ;;  %v361_v8 = vand.u32 7, %v307_v59  ;;  %v2970_v59 = vld [vmem:[%s3606_s1 + $0xd8] sm:$0xff]  }
  0x20   : > { %2719 = vmatpush3.bf16.msra.mxu0 %v2929_v23  ;;  %2624 = vmatprep.subr.bf16.mxu1 %v2930_v29  ;;  %v3156_v9 = vld [vmem:[#allocation2 + $0xf] sm:$0xff]  ;;  %v302_v23 = vadd.s32 16, %v3115_v38  ;;  %vm3250_vm11 = vmpackc.low %vm2997_vm3, %vm3238_vm8  ;;  %vm3284_vm14 = vcmp.ge.s32.totalorder %v340_v39, 1  ;;  %v2956_v38 = vld [vmem:[%s3606_s1 + $0xa0] sm:$0xff]  }
  0x21   : > { %2720 = vmatprep.subr.bf16.mxu0 %v2931_v34  ;;  %v3158_v10 = vld [vmem:[#allocation2 + $0x11] sm:$0xff]  ;;  %v3166_v12 = vld [vmem:[#allocation2 + $0x19] sm:$0xff]  ;;  %v2201_v18 = vpack.c.bf16 %v3156_v9, %v2996_v35  ;;  %v3626_v46 = vsel %vm3250_vm11, 4294967295, %v3625_v46  ;;  %v3273_v52 = vld [vmem:[#allocation2 + $0x21] sm:$0xff] }
  0x22   : > { %v2333_v20 = vpack.c.bf16 %v3166_v12, %v3158_v10  ;;  %v326_v28 = vand.u32 7, %v302_v23  ;;  %v3260_v49 = vld [vmem:[#allocation2 + $0x1f] sm:$0xff]  ;;  %v3292_v58 = vld [vmem:[#allocation2 + $0x27] sm:$0xff]  ;;  %v3295_v60 = vld [vmem:[#allocation2 + $0x2f] sm:$0xff] }
  0x23   : > { %2625 = vmatpush3.bf16.msra.mxu1 %v2930_v29  ;;  %v333_v29 = vand.u32 7, %v303_v24  ;;  %v3242_v43 = vld [vmem:[#allocation2 + $0x49] sm:$0xff]  ;;  %v3306_v1 = vld [vmem:[#allocation2 + $0x31] sm:$0xff]  ;;  %v3354_v24 = vld [vmem:[#allocation2 + $0x41] sm:$0xff] }
  0x24   : > { %2721 = vmatpush3.bf16.msra.mxu0 %v2931_v34  ;;  %2634 = vmatprep.subr.bf16.mxu1 %v2932_v41  ;;  %v2945_v34 = vld [vmem:[%s3606_s1 + $0x170] sm:$0xff]   ;;  %vm3227_vm6 = vcmp.ge.s32.totalorder %v326_v28, 1  ;;  %vm430_vm9 = vcmp.le.s32.totalorder %v326_v28, 6  ;;  %v3256_v47 = vpack.c.bf16 %v2996_v35, %v3242_v43  ;;  %v2954_v28 = vld [vmem:[%s3606_s1 + $0x98] sm:$0xff]  }
  0x25   : > { %2730 = vmatprep.subr.bf16.mxu0 %v2933_v42  ;;  %vm3231_vm7 = vcmp.ge.s32.totalorder %v333_v29, 1  ;;  %vm431_vm10 = vcmp.le.s32.totalorder %v333_v29, 6  ;;  %v2342_v29 = vpack.c.bf16 %v3242_v43, %v3354_v24  ;;  %v3451_v43 = vpack.c.bf16 %v3273_v52, %v3166_v12  ;;  %v2968_v12 = vld [vmem:[%s3606_s1 + $0xd0] sm:$0xff]  }
  0x26   : > { %2627 = vmatmul.mubr.bf16.vlgmr.msra.gmra.mrb[0].mxu1 %v3125_v45  ;;  %vm3266_vm12 = vmpackc.low %vm3231_vm7, %vm3227_vm6 }
  0x27   : > { %2635 = vmatpush3.bf16.msra.mxu1 %v2932_v41  ;;  %2723 = vmatmul.mubr.bf16.vlgmr.msra.gmra.mrb[0].mxu0 %v1140_v48  ;;  %v347_v41 = vand.u32 7, %v305_v31  ;;  %v3258_v48 = vld [vmem:[#allocation2 + $0x17] sm:$0xff]  ;;  %vm3278_vm13 = vmpackc.low %vm431_vm10, %vm430_vm9  ;;  %vm3344_vm10 = vcmp.ge.s32.totalorder %v354_v32, 1  ;;  %v2237_v32 = vpack.c.bf16 %v3158_v10, %v2996_v35  ;;  %v2958_v10 = vld [vmem:[%s3606_s1 + $0xa8] sm:$0xff]  }
  0x28   : > { %2731 = vmatpush3.bf16.msra.mxu0 %v2933_v42  ;;  %2636 = vmatprep.subr.bf16.mxu1 %v2934_v50  ;;  %v2204_v63 = vpack.c.bf16 %v3260_v49, %v3258_v48  ;;  %v2955_v31 = vld [vmem:[%s3606_s1 + $0x198] sm:$0xff]   ;;  %v2974_v42 = vld [vmem:[%s3606_s1 + $0xe8] sm:$0xff]  }
  0x29   : > { %2732 = vmatprep.subr.bf16.mxu0 %v2935_v55  ;;  %2630 = vmatprep.mubr.bf16.mxu1 %v3154_v5  ;;  %vm3288_vm15 = vcmp.ge.s32.totalorder %v347_v41, 1  ;;  %vm433_vm6 = vcmp.le.s32.totalorder %v347_v41, 6  ;;  %v2965_v41 = vld [vmem:[%s3606_s1 + $0x1c0] sm:$0xff]  }
  0x2a   : > { %2726 = vmatprep.mubr.bf16.mxu0 %v1141_v6  ;;  %v3313_v6 = vld [vmem:[#allocation2 + $0x39] sm:$0xff]  ;;  %vm3319_vm7 = vmpackc.low %vm3288_vm15, %vm3284_vm14  ;;  %vm3350_vm14 = vcmp.ge.s32.totalorder %v361_v8, 1  ;;  %vm3362_vm15 = vcmp.le.s32.totalorder %v361_v8, 6 }
  0x2b   : > { %2637 = vmatpush3.bf16.msra.mxu1 %v2934_v50  ;;  %vm3649_vm11 = vmpackc.low %vm3362_vm15, %vm3238_vm8  ;;  %v3485_v56 = vpack.c.bf16 %v3354_v24, %v3313_v6 }
  0x2c   : > { %2733 = vmatpush3.bf16.msra.mxu0 %v2935_v55  ;;  %2638 = vmatprep.subr.bf16.mxu1 %v2936_v62  ;;  %v3282_v55 = vld [vmem:[#allocation2 + $0x29] sm:$0xff] }
  0x2d   : > { %2734 = vmatprep.subr.bf16.mxu0 %v2937_v3  ;;  %v2336_v2 = vpack.c.bf16 %v3282_v55, %v3273_v52  ;;  %v3472_v52 = vld [vmem:[#allocation2 + $0x47] sm:$0xff] }
  0x2e   : > { %2631 = vmatmul.mubr.bf16.gmra.mrb[4].mxu1 %v3171_v14  ;;  %v2378_v57 = vpack.c.bf16 %v2996_v35, %v3472_v52  ;;  %v2972_v35 = vld [vmem:[%s3606_s1 + $0xe0] sm:$0xff]  }
  0x2f   : > { %2639 = vmatpush3.bf16.msra.mxu1 %v2936_v62  ;;  %2727 = vmatmul.mubr.bf16.gmra.mrb[4].mxu0 %v1142_v15  ;;  %v2971_v62 = vld [vmem:[%s3606_s1 + $0x1d8] sm:$0xff]  }
  0x30   : > { %2735 = vmatpush3.bf16.msra.mxu0 %v2937_v3  ;;  %2640 = vmatprep.subr.bf16.mxu1 %v2938_v13  ;;  %v2951_v3 = vld [vmem:[%s3606_s1 + $0x188] sm:$0xff]  }
  0x31   : > { %2736 = vmatprep.subr.bf16.mxu0 %v2939_v17  ;;  %2650 = vmatprep.mubr.msk.bf16.mxu1 %vm2200_vm4, %v2201_v18  ;;  %vm3297_vm4 = vcmp.le.s32.totalorder %v340_v39, 6  ;;  %v2339_v18 = vpack.c.bf16 %v3313_v6, %v3306_v1  ;;  %v2963_v39 = vld [vmem:[%s3606_s1 + $0x1b8] sm:$0xff]   ;;  %v2981_v6 = vld [vmem:[%s3606_s1 + $0x208] sm:$0xff]  }
  0x32   : > { %2746 = vmatprep.mubr.msk.bf16.mxu0 %vm3611_vm5, %v2333_v20  ;;  %vm3329_vm9 = vmpackc.low %vm433_vm6, %vm3297_vm4  ;;  %v3340_v20 = vld [vmem:[#allocation2 + $0x37] sm:$0xff]  ;;  %vm3387_vm5 = vcmp.ge.s32.totalorder %v312_v61, 1  ;;  %v2957_v61 = vld [vmem:[%s3606_s1 + $0x1a0] sm:$0xff]  }
  0x33   : > { %2641 = vmatpush3.bf16.msra.mxu1 %v2938_v13  ;;  %v3325_v13 = vpack.c.bf16 %v3295_v60, %v3292_v58  ;;  %vm2209_vm4 = vmpackc.low %vm3350_vm14, %vm3344_vm10  ;;  %v2279_v8 = vpack.c.bf16 %v3340_v20, %v3295_v60 }
  0x34   : > { %2737 = vmatpush3.bf16.msra.mxu0 %v2939_v17  ;;  %2642 = vmatprep.subr.bf16.mxu1 %v2940_v21  ;;  %v2952_v17 = vld [vmem:[%s3606_s1 + $0x90] sm:$0xff]   ;;  %vm2236_vm6 = vmpackc.low %vm3173_vm2, %vm2997_vm3 }
  0x35   : > { %2738 = vmatprep.subr.bf16.mxu0 %v2941_v22  ;;  %vm2272_vm1 = vmpackc.low %vm3150_vm0, %vm3387_vm5  ;;  %vm3651_vm0 = vnez %v3616_v11  ;;  %v2986_v11 = vld [vmem:[%s3606_s1 + $0x230] sm:$0xff]  }
  0x37   : > { %2643 = vmatpush3.bf16.msra.mxu1 %v2940_v21 }
  0x38   : > { %2739 = vmatpush3.bf16.msra.mxu0 %v2941_v22  ;;  %2644 = vmatprep.subr.bf16.mxu1 %v2942_v26  ;;  %v3348_v22 = vld [vmem:[#allocation2 + $0x3f] sm:$0xff] }
  0x39   : > { %2740 = vmatprep.subr.bf16.mxu0 %v2943_v27 }
  0x3b   : > { %2645 = vmatpush3.bf16.msra.mxu1 %v2942_v26 }
  0x3c   : > { %2741 = vmatpush3.bf16.msra.mxu0 %v2943_v27  ;;  %2646 = vmatprep.subr.bf16.mxu1 %v2944_v33  ;;  %v3370_v27 = vpack.c.bf16 %v3348_v22, %v3340_v20 }
  0x3d   : > { %2742 = vmatprep.subr.bf16.mxu0 %v2945_v34 }
  0x3f   : > { %2647 = vmatpush3.bf16.msra.mxu1 %v2944_v33  ;;  %v2959_v33 = vld [vmem:[%s3606_s1 + $0x1a8] sm:$0xff]  }
  0x40   : > { %2743 = vmatpush3.bf16.msra.mxu0 %v2945_v34  ;;  %2648 = vmatprep.subr.bf16.mxu1 %v2946_v40  ;;  %v2960_v34 = vld [vmem:[%s3606_s1 + $0xb0] sm:$0xff]  }
  0x41   : > { %2744 = vmatprep.subr.bf16.mxu0 %v2947_v44 }
  0x43   : > { %2649 = vmatpush3.bf16.msra.mxu1 %v2946_v40  ;;  %v2964_v40 = vld [vmem:[%s3606_s1 + $0xc0] sm:$0xff]  }
  0x44   : > { %2745 = vmatpush3.bf16.msra.mxu0 %v2947_v44  ;;  %2658 = vmatprep.subr.bf16.mxu1 %v2948_v51  ;;  %v2966_v44 = vld [vmem:[%s3606_s1 + $0xc8] sm:$0xff]  }
  0x45   : > { %2754 = vmatprep.subr.bf16.mxu0 %v2949_v53 }
  0x46   : > { %2651 = vmatmul.mubr.msk.bf16.vlgmr.msra.gmra.mrb[0].mxu1 %vm3266_vm12, %v2204_v63 }
  0x47   : > { %2659 = vmatpush3.bf16.msra.mxu1 %v2948_v51  ;;  %2747 = vmatmul.mubr.msk.bf16.vlgmr.msra.gmra.mrb[0].mxu0 %vm3278_vm13, %v2336_v2  ;;  %v2967_v51 = vld [vmem:[%s3606_s1 + $0x1c8] sm:$0xff]   ;;  %v2980_v2 = vld [vmem:[%s3606_s1 + $0x200] sm:$0xff]  }
  0x48   : > { %2755 = vmatpush3.bf16.msra.mxu0 %v2949_v53  ;;  %2660 = vmatprep.subr.bf16.mxu1 %v2950_v0  ;;  %v3461_v53 = vpack.c.bf16 %v3306_v1, %v3282_v55  ;;  %v2969_v55 = vld [vmem:[%s3606_s1 + $0x1d0] sm:$0xff]   ;;  %v2979_v1 = vld [vmem:[%s3606_s1 + $0x1f8] sm:$0xff]  }
  0x49   : > { %2756 = vmatprep.subr.bf16.mxu0 %v2951_v3  ;;  %2654 = vmatprep.mubr.msk.bf16.mxu1 %vm3319_vm7, %v3325_v13 }
  0x4a   : > { %2750 = vmatprep.mubr.msk.bf16.mxu0 %vm3329_vm9, %v2339_v18 }
  0x4b   : > { %2661 = vmatpush3.bf16.msra.mxu1 %v2950_v0  ;;  %v2978_v0 = vld [vmem:[%s3606_s1 + $0xf8] sm:$0xff]  }
  0x4c   : > { %2757 = vmatpush3.bf16.msra.mxu0 %v2951_v3  ;;  %2662 = vmatprep.subr.bf16.mxu1 %v2952_v17  ;;  %v2276_v3 = vpack.c.bf16 %v3292_v58, %v3260_v49  ;;  %v2982_v49 = vld [vmem:[%s3606_s1 + $0x210] sm:$0xff]   ;;  %v2282_v58 = vpack.c.bf16 %v3472_v52, %v3348_v22 }
  0x4d   : > { %2758 = vmatprep.subr.bf16.mxu0 %v2953_v25 }
  0x4e   : > { %2655 = vmatmul.mubr.msk.bf16.gmra.mrb[4].mxu1 %vm2209_vm4, %v3370_v27 }
  0x4f   : > { %2663 = vmatpush3.bf16.msra.mxu1 %v2952_v17  ;;  %2751 = vmatmul.mubr.msk.bf16.gmra.mrb[4].mxu0 %vm3649_vm11, %v2342_v29  ;;  %vm2377_vm11 = vmpackc.low %vm2997_vm3, %vm3344_vm10  ;;  %vm2067_vm3 = vcmask 1040384  }
  0x50   : > { %2759 = vmatpush3.bf16.msra.mxu0 %v2953_v25  ;;  %2664 = vmatprep.subr.bf16.mxu1 %v2954_v28 }
  0x51   : > { %2760 = vmatprep.subr.bf16.mxu0 %v2955_v31  ;;  %2674 = vmatprep.mubr.msk.bf16.mxu1 %vm2236_vm6, %v2237_v32  ;;  %vm3650_vm6 = vmpackc.low %vm3362_vm15, %vm3238_vm8 }
  0x52   : > { %2770 = vmatprep.mubr.msk.bf16.mxu0 %vm2272_vm1, %v2204_v63  ;;  %v2273_v63 = vpack.c.bf16 %v3258_v48, %v3156_v9  ;;  %v2973_v9 = vld [vmem:[%s3606_s1 + $0x1e0] sm:$0xff]   ;;  %v2975_v48 = vld [vmem:[%s3606_s1 + $0x1e8] sm:$0xff]  }
  0x53   : > { %2665 = vmatpush3.bf16.msra.mxu1 %v2954_v28 }
  0x54   : > { %2761 = vmatpush3.bf16.msra.mxu0 %v2955_v31  ;;  %2666 = vmatprep.subr.bf16.mxu1 %v2956_v38 }
  0x55   : > { %2762 = vmatprep.subr.bf16.mxu0 %v2957_v61 }
  0x57   : > { %2667 = vmatpush3.bf16.msra.mxu1 %v2956_v38 }
  0x58   : > { %2763 = vmatpush3.bf16.msra.mxu0 %v2957_v61  ;;  %2668 = vmatprep.subr.bf16.mxu1 %v2958_v10 }
  0x59   : > { %2764 = vmatprep.subr.bf16.mxu0 %v2959_v33 }
  0x5b   : > { %2669 = vmatpush3.bf16.msra.mxu1 %v2958_v10 }
  0x5c   : > { %2765 = vmatpush3.bf16.msra.mxu0 %v2959_v33  ;;  %2670 = vmatprep.subr.bf16.mxu1 %v2960_v34 }
  0x5d   : > { %2766 = vmatprep.subr.bf16.mxu0 %v2961_v36 }
  0x5f   : > { %2671 = vmatpush3.bf16.msra.mxu1 %v2960_v34 }
  0x60   : > { %2767 = vmatpush3.bf16.msra.mxu0 %v2961_v36  ;;  %2672 = vmatprep.subr.bf16.mxu1 %v2962_v37 }
  0x61   : > { %2768 = vmatprep.subr.bf16.mxu0 %v2963_v39 }
  0x63   : > { %2673 = vmatpush3.bf16.msra.mxu1 %v2962_v37 }
  0x64   : > { %2769 = vmatpush3.bf16.msra.mxu0 %v2963_v39  ;;  %2682 = vmatprep.subr.bf16.mxu1 %v2964_v40 }
  0x65   : > { %2778 = vmatprep.subr.bf16.mxu0 %v2965_v41 }
  0x66   : > { %2675 = vmatmul.mubr.msk.bf16.vlgmr.msra.gmra.mrb[0].mxu1 %vm3278_vm13, %v3451_v43 }
  0x67   : > { %2683 = vmatpush3.bf16.msra.mxu1 %v2964_v40  ;;  %2771 = vmatmul.mubr.msk.bf16.vlgmr.msra.gmra.mrb[0].mxu0 %vm3266_vm12, %v3325_v13 }
  0x68   : > { %2779 = vmatpush3.bf16.msra.mxu0 %v2965_v41  ;;  %2684 = vmatprep.subr.bf16.mxu1 %v2966_v44 }
  0x69   : > { %2780 = vmatprep.subr.bf16.mxu0 %v2967_v51  ;;  %2678 = vmatprep.mubr.msk.bf16.mxu1 %vm3329_vm9, %v3461_v53 }
  0x6a   : > { %2774 = vmatprep.mubr.msk.bf16.mxu0 %vm3319_vm7, %v3370_v27 }
  0x6b   : > { %2685 = vmatpush3.bf16.msra.mxu1 %v2966_v44 }
  0x6c   : > { %2781 = vmatpush3.bf16.msra.mxu0 %v2967_v51  ;;  %2686 = vmatprep.subr.bf16.mxu1 %v2968_v12 }
  0x6d   : > { %2782 = vmatprep.subr.bf16.mxu0 %v2969_v55 }
  0x6e   : > { %2679 = vmatmul.mubr.msk.bf16.gmra.mrb[4].mxu1 %vm3650_vm6, %v3485_v56 }
  0x6f   : > { %2687 = vmatpush3.bf16.msra.mxu1 %v2968_v12  ;;  %2775 = vmatmul.mubr.msk.bf16.gmra.mrb[4].mxu0 %vm2377_vm11, %v2378_v57 }
  0x70   : > { %2783 = vmatpush3.bf16.msra.mxu0 %v2969_v55  ;;  %2688 = vmatprep.subr.bf16.mxu1 %v2970_v59 }
  0x71   : > { %2784 = vmatprep.subr.bf16.mxu0 %v2971_v62  ;;  %2698 = vmatprep.mubr.msk.bf16.mxu1 %vm2272_vm1, %v2273_v63  ;;  %vm3652_vm1 = vmpackc.low %vm3173_vm2, %vm3651_vm0  ;;  %vm3653_vm2 = vnez %v3626_v46 }
  0x72   : > { %2794 = vmatprep.mubr.bf16.mxu0 %v3125_v45  ;;  %v2977_v45 = vld [vmem:[%s3606_s1 + $0x1f0] sm:$0xff]  }
  0x73   : > { %2689 = vmatpush3.bf16.msra.mxu1 %v2970_v59 }
  0x74   : > { %2785 = vmatpush3.bf16.msra.mxu0 %v2971_v62  ;;  %2690 = vmatprep.subr.bf16.mxu1 %v2972_v35 }
  0x75   : > { %2786 = vmatprep.subr.bf16.mxu0 %v2973_v9 }
  0x77   : > { %2691 = vmatpush3.bf16.msra.mxu1 %v2972_v35 }
  0x78   : > { %2787 = vmatpush3.bf16.msra.mxu0 %v2973_v9  ;;  %2692 = vmatprep.subr.bf16.mxu1 %v2974_v42 }
  0x79   : > { %2788 = vmatprep.subr.bf16.mxu0 %v2975_v48 }
  0x7b   : > { %2693 = vmatpush3.bf16.msra.mxu1 %v2974_v42 }
  0x7c   : > { %2789 = vmatpush3.bf16.msra.mxu0 %v2975_v48  ;;  %2694 = vmatprep.subr.bf16.mxu1 %v2976_v4 }
  0x7d   : > { %2790 = vmatprep.subr.bf16.mxu0 %v2977_v45 }
  0x7f   : > { %2695 = vmatpush3.bf16.msra.mxu1 %v2976_v4 }
  0x80   : > { %2791 = vmatpush3.bf16.msra.mxu0 %v2977_v45  ;;  %2696 = vmatprep.subr.bf16.mxu1 %v2978_v0 }
  0x81   : > { %2792 = vmatprep.subr.bf16.mxu0 %v2979_v1 }
  0x83   : > { %2697 = vmatpush3.bf16.msra.mxu1 %v2978_v0 }
  0x84   : > { %2793 = vmatpush3.bf16.msra.mxu0 %v2979_v1  ;;  %2826 = vmatprep.subr.bf16.mxu1 %v2980_v2 }
  0x85   : > { %2802 = vmatprep.subr.bf16.mxu0 %v2980_v2 }
  0x86   : > { %2699 = vmatmul.mubr.msk.bf16.vlgmr.msra.gmra.mrb[0].mxu1 %vm3266_vm12, %v2276_v3 }
  0x87   : > { %2795 = vmatmul.mubr.bf16.vlgmr.msra.gmra.mrb[0].mxu0 %v3154_v5  ;;  %2834 = vmatpush3.bf16.msra.mxu1 %v2980_v2  ;;  %v2983_v5 = vld [vmem:[%s3606_s1 + $0x218] sm:$0xff]  }
  0x88   : > { %2803 = vmatpush3.bf16.msra.mxu0 %v2980_v2  ;;  %2827 = vmatprep.subr.bf16.mxu1 %v2981_v6 }
  0x89   : > { %2804 = vmatprep.subr.bf16.mxu0 %v2981_v6  ;;  %2702 = vmatprep.mubr.msk.bf16.mxu1 %vm3319_vm7, %v2279_v8 }
  0x8a   : > { %2798 = vmatprep.mubr.bf16.mxu0 %v3171_v14  ;;  %v2984_v14 = vld [vmem:[%s3606_s1 + $0x220] sm:$0xff]  }
  0x8b   : > { %2835 = vmatpush3.bf16.msra.mxu1 %v2981_v6 }
  0x8c   : > { %2805 = vmatpush3.bf16.msra.mxu0 %v2981_v6  ;;  %2828 = vmatprep.subr.bf16.mxu1 %v2982_v49 }
  0x8d   : > { %2806 = vmatprep.subr.bf16.mxu0 %v2982_v49 }
  0x8e   : > { %2703 = vmatmul.mubr.msk.bf16.gmra.mrb[4].mxu1 %vm2209_vm4, %v2282_v58 }
  0x8f   : > { %2799 = vmatmul.mubr.bf16.gmra.mrb[4].mxu0 %v3184_v19  ;;  %2836 = vmatpush3.bf16.msra.mxu1 %v2982_v49  ;;  %v2985_v19 = vld [vmem:[%s3606_s1 + $0x228] sm:$0xff]  }
  0x90   : > { %2807 = vmatpush3.bf16.msra.mxu0 %v2982_v49  ;;  %2829 = vmatprep.subr.bf16.mxu1 %v2983_v5 }
  0x91   : > { %2808 = vmatprep.subr.bf16.mxu0 %v2983_v5  ;;  %2818 = vmatprep.mubr.msk.bf16.mxu0 %vm3652_vm1, %v3451_v43 }
  0x92   : > { %2822 = vmatprep.mubr.msk.bf16.mxu1 %vm3329_vm9, %v3485_v56 }
  0x93   : > { %2837 = vmatpush3.bf16.msra.mxu1 %v2983_v5 }
  0x94   : > { %2809 = vmatpush3.bf16.msra.mxu0 %v2983_v5  ;;  %2830 = vmatprep.subr.bf16.mxu1 %v2984_v14 }
  0x95   : > { %2810 = vmatprep.subr.bf16.mxu0 %v2984_v14 }
  0x97   : > { %2838 = vmatpush3.bf16.msra.mxu1 %v2984_v14 }
  0x98   : > { %2811 = vmatpush3.bf16.msra.mxu0 %v2984_v14  ;;  %2831 = vmatprep.subr.bf16.mxu1 %v2985_v19 }
  0x99   : > { %2812 = vmatprep.subr.bf16.mxu0 %v2985_v19 }
  0x9b   : > { %2839 = vmatpush3.bf16.msra.mxu1 %v2985_v19 }
  0x9c   : > { %2813 = vmatpush3.bf16.msra.mxu0 %v2985_v19  ;;  %2832 = vmatprep.subr.bf16.mxu1 %v2986_v11 }
  0x9d   : > { %2814 = vmatprep.subr.bf16.mxu0 %v2986_v11 }
  0x9f   : > { %2840 = vmatpush3.bf16.msra.mxu1 %v2986_v11 }
  0xa0   : > { %2815 = vmatpush3.bf16.msra.mxu0 %v2986_v11  ;;  %2833 = vmatprep.subr.bf16.mxu1 %v2987_v16 }
  0xa1   : > { %2816 = vmatprep.subr.bf16.mxu0 %v2987_v16 }
  0xa3   : > { %2841 = vmatpush3.bf16.msra.mxu1 %v2987_v16 }
  0xa4   : > { %2817 = vmatpush3.bf16.msra.mxu0 %v2987_v16 }
  0xa6   : > { %2823 = vmatmul.mubr.msk.bf16.vlgmr.msra.gmra.mrb[8].mxu1 %vm3653_vm2, %v3256_v47 }
  0xa7   : > { %2819 = vmatmul.mubr.msk.bf16.vlgmr.msra.gmra.mrb[0].mxu0 %vm3278_vm13, %v3461_v53 }
 0x159   : > { %v2700_v50 = vpop.f32.mrb[0].mxu1 }
 0x15a   : > { %v1092_v60 = vpop.f32.mrb[1].mxu1 }
 0x15b   : > { %v2701_v7 = vpop.f32.mrb[2].mxu1 }
 0x15c   : > { %v1095_v13 = vpop.f32.mrb[3].mxu1 }
 0x161   : > { %v2704_v15 = vpop.f32.mrb[4].mxu1 }
 0x162   : > { %v2800_v17 = vpop.f32.mrb[4].mxu0  ;;  %v1108_v18 = vpop.f32.mrb[5].mxu1 }
 0x163   : > { %v2846_v20 = vadd.f32 %v2800_v17, %v2704_v15  ;;  %v1788_v21 = vpop.f32.mrb[5].mxu0  ;;  %v2705_v22 = vpop.f32.mrb[6].mxu1 }
 0x164   : > { %v2848_v23 = vadd.f32 %v1788_v21, %v1108_v18  ;;  %v2801_v24 = vpop.f32.mrb[6].mxu0  ;;  %v1111_v25 = vpop.f32.mrb[7].mxu1 }
 0x165   : > { %v2850_v46 = vadd.f32 %v2801_v24, %v2705_v22  ;;  %v1791_v47 = vpop.f32.mrb[7].mxu0 }
 0x166   : > { %v2852_v26 = vadd.f32 %v1791_v47, %v1111_v25 }
 0x179   : > { %v2824_v27 = vpop.f32.mrb[8].mxu1 }
 0x17a   : > { %v2820_v54 = vpop.f32.mrb[0].mxu0  ;;  %v2847_v28 = vadd.f32 %v2846_v20, %v2824_v27  ;;  %v1970_v29 = vpop.f32.mrb[9].mxu1 }
 0x17b   : > { %v2842_v30 = vadd.f32 %v2820_v54, %v2700_v50  ;;  %v1954_v31 = vpop.f32.mrb[1].mxu0  ;;  %v2849_v32 = vadd.f32 %v2848_v23, %v1970_v29  ;;  %v2825_v38 = vpop.f32.mrb[10].mxu1 }
 0x17c   : > { %v2843_v61 = vadd.f32 %v1954_v31, %v1092_v60  ;;  %v2821_v10 = vpop.f32.mrb[2].mxu0  ;;  %v2851_v33 = vadd.f32 %v2850_v46, %v2825_v38  ;;  %v1973_v34 = vpop.f32.mrb[11].mxu1  ;;  %v2052_v0 = vmul.f32 %v2847_v28, %v2847_v28 }
 0x17d   : > { %v2844_v36 = vadd.f32 %v2821_v10, %v2701_v7  ;;  %v1957_v37 = vpop.f32.mrb[3].mxu0  ;;  %v2853_v39 = vadd.f32 %v2852_v26, %v1973_v34  ;;  %v2048_v55 = vmul.f32 %v2842_v30, %v2842_v30  ;;  %v2050_v35 = vmul.f32 %v2849_v32, %v2849_v32 }
 0x17e   : > { %v2494_v40 = vpack.c.bf16 %v2851_v33, %v2847_v28  ;;  %v2845_v41 = vadd.f32 %v1957_v37, %v1095_v13  ;;  %v2046_v51 = vmul.f32 %v2843_v61, %v2843_v61  ;;  %v2053_v3 = vmul.f32 %v2851_v33, %v2851_v33 }
 0x17f   : > { %v2484_v43 = vpack.c.bf16 %v2844_v36, %v2842_v30  ;;  %v2489_v44 = vpack.c.bf16 %v2853_v39, %v2849_v32  ;;  %v2049_v59 = vmul.f32 %v2844_v36, %v2844_v36  ;;  %v2051_v4 = vmul.f32 %v2853_v39, %v2853_v39 }
 0x180   : > { %2501 = vst [vmem:[%s231_s17 + $0x18] sm:$0xff] %v2494_v40   ;;  %v2479_v53 = vpack.c.bf16 %v2845_v41, %v2843_v61  ;;  %v2033_v12 = vadd.f32 %v2845_v41, %v2843_v61  ;;  %v2047_v52 = vmul.f32 %v2845_v41, %v2845_v41 }
 0x181   : > { %2499 = vst [vmem:[%s231_s17 + $0x8] sm:$0xff] %v2484_v43   ;;  %2500 = vst [vmem:[%s231_s17 + $0x10] sm:$0xff] %v2489_v44  }
 0x182   : > { %2480 = vst [vmem:[%s231_s17] sm:$0xff] %v2479_v53   ;;  %v2034_v56 = vadd.f32 %v2842_v30, %v2033_v12  ;;  %v2054_v57 = vadd.f32 %v2047_v52, %v2046_v51 }
 0x184   : > { %v2055_v62 = vadd.f32 %v2054_v57, %v2048_v55  ;;  %v2035_v63 = vadd.f32 %v2844_v36, %v2034_v56 }
 0x186   : > { %v2036_v9 = vadd.f32 %v2849_v32, %v2035_v63  ;;  %v2056_v42 = vadd.f32 %v2055_v62, %v2049_v59 }
 0x188   : > { %v2037_v48 = vadd.f32 %v2853_v39, %v2036_v9  ;;  %v2057_v45 = vadd.f32 %v2056_v42, %v2050_v35 }
 0x18a   : > { %v2038_v1 = vadd.f32 %v2847_v28, %v2037_v48  ;;  %v2058_v2 = vadd.f32 %v2057_v45, %v2051_v4 }
 0x18c   : > { %v2039_v6 = vadd.f32 %v2851_v33, %v2038_v1  ;;  %v2059_v8 = vadd.f32 %v2058_v2, %v2052_v0 }
 0x18e   : > { %v2040_v49 = vrot.slane %v2039_v6, 4  ;;  %v2060_v58 = vadd.f32 %v2059_v8, %v2053_v3 }
 0x190   : > { %v2041_v5 = vadd.f32 %v2040_v49, %v2039_v6  ;;  %v2061_v14 = vrot.slane %v2060_v58, 4 }
 0x192   : > { %v2042_v19 = vrot.slane %v2041_v5, 2  ;;  %v2062_v11 = vadd.f32 %v2061_v14, %v2060_v58 }
 0x194   : > { %v2043_v16 = vadd.f32 %v2042_v19, %v2041_v5  ;;  %v2063_v50 = vrot.slane %v2062_v11, 2 }
 0x196   : > { %v2044_v60 = vrot.slane %v2043_v16, 1  ;;  %v2064_v7 = vadd.f32 %v2063_v50, %v2062_v11 }
 0x198   : > { %v2065_v13 = vrot.slane %v2064_v7, 1  ;;  %v2045_v15 = vadd.f32 %v2044_v60, %v2043_v16 }
 0x19a   : > { %v2066_v17 = vadd.f32 %v2065_v13, %v2064_v7 }
 0x19c   : > { %v2068_v18 = vsel %vm2067_vm3, %v2045_v15, %v2066_v17 }
 0x19d   : > { %2069 = vst [vmem:[%s235_s23] sm:$0x3] %v2068_v18 }
 0x19e PF: > { %s16_s18 = sadd.s32 1, %s2994_s18  }
 0x19f   : > { %p13_p4 = scmp.ge.s32.totalorder %s16_s18, 4  }
 0x1a1   :  { %15 = sbr.rel (!%p13_p4) target bundleno = 1 (0x1), region = 86 }

</bundles_post_ra>
